<compile_context>
chip_gen: v5e
topology: v5e:2x2
jax: 0.10.0
libtpu: 0.0.40
codegen_flags: <defaults>
</compile_context>

<pallas_src>
import functools

import jax
import jax.numpy as jnp
from jax.experimental import pallas as pl
from jax.experimental.pallas import tpu as pltpu


# ----------------------------------------------------------------------------
# Kernel
# ----------------------------------------------------------------------------
def lstm_cell_kernel(x_ref, h0_ref, c0_ref, wx_ref, wh_ref, b_ref,
                     h_ref, c_ref, *, hidden_size):
    H = hidden_size

    # Two MXU pushes with f32 accumulate; operands stay at their stored dtype
    # (bf16 hits the MXU natively).  Same total K cycles as a fused [x|h0]
    # matmul, but no (B, D+H) concat ever touches HBM.
    z = jnp.dot(x_ref[...], wx_ref[...], preferred_element_type=jnp.float32)
    z = z + jnp.dot(h0_ref[...], wh_ref[...], preferred_element_type=jnp.float32)
    z = z + b_ref[...].astype(jnp.float32)

    # Gate slices fall on lane-tile boundaries when H % 128 == 0 (free views).
    zm = z[:, 0 * H:1 * H]
    zf = z[:, 1 * H:2 * H]
    zi = z[:, 2 * H:3 * H]
    zo = z[:, 3 * H:4 * H]

    def sigmoid_via_tanh(v):
        # sigmoid(v) = 0.5 * tanh(0.5 * v) + 0.5 -> one EUP op per gate
        # (3 sigmoids + 2 tanhs share the single EUP VLIW slot).
        return 0.5 * jnp.tanh(0.5 * v) + 0.5

    # All post-matmul gate math in f32 (v5e has no bf16 VPU/EUP).
    main_gate = jnp.tanh(zm)
    forget_gate = sigmoid_via_tanh(zf)
    input_gate = sigmoid_via_tanh(zi)
    output_gate = sigmoid_via_tanh(zo)

    c0 = c0_ref[...].astype(jnp.float32)
    c = forget_gate * c0 + input_gate * main_gate
    h = output_gate * jnp.tanh(c)

    # Two direct lane-dense stores (no packed-slab concat / temporary).
    h_ref[...] = h.astype(h_ref.dtype)
    c_ref[...] = c.astype(c_ref.dtype)


# ----------------------------------------------------------------------------
# Wrapper
# ----------------------------------------------------------------------------
def stack_params(params):
    """Pre-stack the 8 weight matrices / 4 biases ONCE (call at init time).

    Gate order (m, f, i, o):  Wx (D, 4H), Wh (H, 4H), bias (1, 4H).
    Doing this per call would add ~2.5x weight HBM traffic in a weight-bound op.
    """
    (wmx, wmh, wfx, wfh, wix, wih, wox, woh, b_m, b_f, b_i, b_o) = params
    wx = jnp.concatenate([wmx, wfx, wix, wox], axis=1)      # (D, 4H)
    wh = jnp.concatenate([wmh, wfh, wih, woh], axis=1)      # (H, 4H)
    b = jnp.concatenate([b_m, b_f, b_i, b_o]).reshape(1, -1)  # (1, 4H)
    return wx, wh, b


def _pick_batch_tile(B, itemsize):
    """Largest divisor of B that is a sublane multiple, <= 512, and leaves
    >= 2 grid iterations (so both v7x TensorCores get work).  Falls back to
    the full batch (block == full array dim is always legal)."""
    sublane = 16 if itemsize == 2 else 8
    for t in range(min(B // 2, 512), 0, -1):
        if B % t == 0 and t % sublane == 0:
            return t
    return B


def ltsm_cell_pallas(x, h0, c0, stacked_params, *, batch_tile=None):
    """x: (B, D), h0/c0: (B, H), stacked_params from stack_params().

    Returns (h, c): h at x.dtype, c in float32 (stable recurrent state)."""
    wx, wh, b = stacked_params
    B, D = x.shape
    H = h0.shape[1]
    assert wx.shape == (D, 4 * H) and wh.shape == (H, 4 * H)
    assert b.shape == (1, 4 * H)

    if batch_tile is None:
        batch_tile = _pick_batch_tile(B, x.dtype.itemsize)
    assert B % batch_tile == 0, "batch size must be divisible by batch_tile"
    grid = (B // batch_tile,)

    # VMEM budget: weights (conservatively counted double-buffered) +
    # double-buffered activation tiles + in-kernel f32 working set + slack.
    w_bytes = (wx.size * wx.dtype.itemsize + wh.size * wh.dtype.itemsize
               + b.size * b.dtype.itemsize)
    act_bytes = batch_tile * (D * x.dtype.itemsize
                              + H * h0.dtype.itemsize
                              + H * c0.dtype.itemsize
                              + H * x.dtype.itemsize        # h out tile
                              + H * 4)                      # c out tile (f32)
    work_bytes = batch_tile * 4 * H * 4 * 4                 # z + gate temps (f32)
    vmem_limit = int(min(max(2 * w_bytes + 2 * act_bytes + work_bytes + (2 << 20),
                             16 << 20),
                         64 << 20))

    kernel = functools.partial(lstm_cell_kernel, hidden_size=H)
    out_shape = (jax.ShapeDtypeStruct((B, H), x.dtype),       # h
                 jax.ShapeDtypeStruct((B, H), jnp.float32))   # c (f32)

    def call(weight_mode):
        def wspec(shape):
            # Constant block index: fetched once, VMEM-resident across the grid.
            if weight_mode is None:
                return pl.BlockSpec(shape, lambda i: (0, 0))
            return pl.BlockSpec(shape, lambda i: (0, 0), pipeline_mode=weight_mode)

        return pl.pallas_call(
            kernel,
            grid=grid,
            in_specs=[
                pl.BlockSpec((batch_tile, D), lambda i: (i, 0)),   # x
                pl.BlockSpec((batch_tile, H), lambda i: (i, 0)),   # h0
                pl.BlockSpec((batch_tile, H), lambda i: (i, 0)),   # c0
                wspec((D, 4 * H)),                                 # Wx (resident)
                wspec((H, 4 * H)),                                 # Wh (resident)
                wspec((1, 4 * H)),                                 # bias (resident)
            ],
            out_specs=(
                pl.BlockSpec((batch_tile, H), lambda i: (i, 0)),   # h
                pl.BlockSpec((batch_tile, H), lambda i: (i, 0)),   # c
            ),
            out_shape=out_shape,
            compiler_params=pltpu.CompilerParams(
                dimension_semantics=("parallel",),
                vmem_limit_bytes=vmem_limit),
        )(x, h0, c0, wx, wh, b)

    try:
        # Weight block never changes -> single-buffer it (halves W's VMEM).
        h, c = call(pl.Buffered(1))
    except Exception:
        # Fallback for JAX versions without pipeline_mode support on TPU.
        h, c = call(None)
    return h, c


# ----------------------------------------------------------------------------
# Pure-JAX reference & init
# ----------------------------------------------------------------------------
def ltsm_cell_reference(x, h0, c0, params):
    """Pure-JAX f32 reference mirroring the PyTorch forward (eval mode)."""
    (wmx, wmh, wfx, wfh, wix, wih, wox, woh, b_m, b_f, b_i, b_o) = params
    main_gate = jnp.tanh(x @ wmx + h0 @ wmh + b_m)
    forget_gate = jax.nn.sigmoid(x @ wfx + h0 @ wfh + b_f)
    input_gate = jax.nn.sigmoid(x @ wix + h0 @ wih + b_i)
    output_gate = jax.nn.sigmoid(x @ wox + h0 @ woh + b_o)
    c = forget_gate * c0 + input_gate * main_gate
    h = output_gate * jnp.tanh(c)
    return h, c


def init_params(key, input_size, hidden_size, dtype=jnp.float32):
    """Deterministic init following LTSMcell.init_weights():
       all weights uniform(-0.07, 0.07); b_f = 1, b_i = -1.
       Weights stored pre-transposed as (in_features, out_features)."""
    initrange = 0.07
    ks = jax.random.split(key, 10)

    def w(k, shape):
        return jax.random.uniform(k, shape, dtype, -initrange, initrange)

    wmx = w(ks[0], (input_size, hidden_size))
    wmh = w(ks[1], (hidden_size, hidden_size))
    wfx = w(ks[2], (input_size, hidden_size))
    wfh = w(ks[3], (hidden_size, hidden_size))
    wix = w(ks[4], (input_size, hidden_size))
    wih = w(ks[5], (hidden_size, hidden_size))
    wox = w(ks[6], (input_size, hidden_size))
    woh = w(ks[7], (hidden_size, hidden_size))
    b_m = w(ks[8], (hidden_size,))
    b_o = w(ks[9], (hidden_size,))
    b_f = jnp.ones((hidden_size,), dtype)
    b_i = -jnp.ones((hidden_size,), dtype)
    return (wmx, wmh, wfx, wfh, wix, wih, wox, woh, b_m, b_f, b_i, b_o)


if __name__ == "__main__":
    # The reference module requires input_size == hidden_size (see NOTE above).
    # H = D = 128 keeps gate slices and output stores lane-aligned; B = 16
    # gives 2 batch tiles (both v7x TensorCores busy) in the f32 path.
    B, D, H = 16, 128, 128

    key = jax.random.PRNGKey(0)
    kx, kh, kc, kp = jax.random.split(key, 4)
    x = jax.random.normal(kx, (B, D), jnp.float32)
    h0 = jax.random.normal(kh, (B, H), jnp.float32)
    c0 = jax.random.normal(kc, (B, H), jnp.float32)
    params = init_params(kp, D, H)
    stacked = stack_params(params)   # stacked ONCE, reused every call / step

    # --- f32 path: strict check against the pure-JAX reference ---
    h, c = ltsm_cell_pallas(x, h0, c0, stacked)
    h = jax.block_until_ready(h)
    c = jax.block_until_ready(c)

    h_ref, c_ref = ltsm_cell_reference(x, h0, c0, params)
    assert jnp.allclose(h, h_ref, atol=1e-5, rtol=1e-5), "f32 h mismatch"
    assert jnp.allclose(c, c_ref, atol=1e-5, rtol=1e-5), "f32 c mismatch"

    # --- bf16 path: bf16 operands hit the MXU natively, f32 accumulate;
    #     c is still emitted in f32 (stable recurrent state) ---
    to_bf16 = lambda t: t.astype(jnp.bfloat16)
    stacked_bf16 = tuple(to_bf16(p) for p in stacked)
    h_bf, c_bf = ltsm_cell_pallas(to_bf16(x), to_bf16(h0), to_bf16(c0),
                                  stacked_bf16)
    h_bf = jax.block_until_ready(h_bf)
    c_bf = jax.block_until_ready(c_bf)
    assert jnp.allclose(h_bf.astype(jnp.float32), h_ref, atol=5e-2), \
        "bf16 h mismatch"
    assert jnp.allclose(c_bf, c_ref, atol=5e-2), "bf16 c mismatch"

    print("KERNEL_OK")
</pallas_src>

<mosaic_0001>
module attributes {stable_mosaic.version = 11 : i64} {
  func.func @lstm_cell_kernel(%arg0: i32, %arg1: memref<8x128xf32, #tpu.memory_space<vmem>>, %arg2: memref<8x128xf32, #tpu.memory_space<vmem>>, %arg3: memref<8x128xf32, #tpu.memory_space<vmem>>, %arg4: memref<128x512xf32, #tpu.memory_space<vmem>>, %arg5: memref<128x512xf32, #tpu.memory_space<vmem>>, %arg6: memref<1x512xf32, #tpu.memory_space<vmem>>, %arg7: memref<8x128xf32, #tpu.memory_space<vmem>>, %arg8: memref<8x128xf32, #tpu.memory_space<vmem>>) attributes {dimension_semantics = [#tpu.dimension_semantics<parallel>], iteration_bounds = array<i64: 2>, scalar_prefetch = 0 : i64, scratch_operands = 0 : i64, tpu.core_type = #tpu.core_type<tc>, window_params = [{transform_indices = @transform_0, window_bounds = array<i64: 8, 128>}, {transform_indices = @transform_1, window_bounds = array<i64: 8, 128>}, {transform_indices = @transform_2, window_bounds = array<i64: 8, 128>}, {pipeline_mode = #tpu.pipeline_mode<synchronous>, transform_indices = @transform_3, window_bounds = array<i64: 128, 512>}, {pipeline_mode = #tpu.pipeline_mode<synchronous>, transform_indices = @transform_4, window_bounds = array<i64: 128, 512>}, {pipeline_mode = #tpu.pipeline_mode<synchronous>, transform_indices = @transform_5, window_bounds = array<i64: 1, 512>}, {transform_indices = @transform_6, window_bounds = array<i64: 8, 128>}, {transform_indices = @transform_7, window_bounds = array<i64: 8, 128>}]} {
    %c0 = arith.constant 0 : index
    %c0_0 = arith.constant 0 : index
    %0 = vector.load %arg1[%c0, %c0_0] : memref<8x128xf32, #tpu.memory_space<vmem>>, vector<8x128xf32>
    %c0_1 = arith.constant 0 : index
    %c0_2 = arith.constant 0 : index
    %1 = vector.load %arg4[%c0_1, %c0_2] : memref<128x512xf32, #tpu.memory_space<vmem>>, vector<128x512xf32>
    %cst = arith.constant dense<0.000000e+00> : vector<8x512xf32>
    %2 = tpu.matmul %0, %1, %cst {dimension_numbers = #tpu.dot_dimension_numbers<[1], [0], [0], [1], [0, 0, 1, 1], [], []>} : vector<8x128xf32>, vector<128x512xf32>, vector<8x512xf32> -> vector<8x512xf32>
    %c0_3 = arith.constant 0 : index
    %c0_4 = arith.constant 0 : index
    %3 = vector.load %arg2[%c0_3, %c0_4] : memref<8x128xf32, #tpu.memory_space<vmem>>, vector<8x128xf32>
    %c0_5 = arith.constant 0 : index
    %c0_6 = arith.constant 0 : index
    %4 = vector.load %arg5[%c0_5, %c0_6] : memref<128x512xf32, #tpu.memory_space<vmem>>, vector<128x512xf32>
    %cst_7 = arith.constant dense<0.000000e+00> : vector<8x512xf32>
    %5 = tpu.matmul %3, %4, %cst_7 {dimension_numbers = #tpu.dot_dimension_numbers<[1], [0], [0], [1], [0, 0, 1, 1], [], []>} : vector<8x128xf32>, vector<128x512xf32>, vector<8x512xf32> -> vector<8x512xf32>
    %6 = arith.addf %2, %5 : vector<8x512xf32>
    %c0_8 = arith.constant 0 : index
    %c0_9 = arith.constant 0 : index
    %7 = vector.load %arg6[%c0_8, %c0_9] : memref<1x512xf32, #tpu.memory_space<vmem>>, vector<1x512xf32>
    %8 = vector.broadcast %7 : vector<1x512xf32> to vector<8x512xf32>
    %9 = arith.addf %6, %8 : vector<8x512xf32>
    %10 = vector.extract_strided_slice %9 {offsets = [0, 0], sizes = [8, 128], strides = [1, 1]} : vector<8x512xf32> to vector<8x128xf32>
    %11 = vector.extract_strided_slice %9 {offsets = [0, 128], sizes = [8, 128], strides = [1, 1]} : vector<8x512xf32> to vector<8x128xf32>
    %12 = vector.extract_strided_slice %9 {offsets = [0, 256], sizes = [8, 128], strides = [1, 1]} : vector<8x512xf32> to vector<8x128xf32>
    %13 = vector.extract_strided_slice %9 {offsets = [0, 384], sizes = [8, 128], strides = [1, 1]} : vector<8x512xf32> to vector<8x128xf32>
    %14 = math.tanh %10 : vector<8x128xf32>
    %cst_10 = arith.constant 5.000000e-01 : f32
    %15 = vector.broadcast %cst_10 : f32 to vector<8x128xf32>
    %16 = arith.mulf %15, %11 : vector<8x128xf32>
    %17 = math.tanh %16 : vector<8x128xf32>
    %cst_11 = arith.constant 5.000000e-01 : f32
    %18 = vector.broadcast %cst_11 : f32 to vector<8x128xf32>
    %19 = arith.mulf %18, %17 : vector<8x128xf32>
    %cst_12 = arith.constant 5.000000e-01 : f32
    %20 = vector.broadcast %cst_12 : f32 to vector<8x128xf32>
    %21 = arith.addf %19, %20 : vector<8x128xf32>
    %cst_13 = arith.constant 5.000000e-01 : f32
    %22 = vector.broadcast %cst_13 : f32 to vector<8x128xf32>
    %23 = arith.mulf %22, %12 : vector<8x128xf32>
    %24 = math.tanh %23 : vector<8x128xf32>
    %cst_14 = arith.constant 5.000000e-01 : f32
    %25 = vector.broadcast %cst_14 : f32 to vector<8x128xf32>
    %26 = arith.mulf %25, %24 : vector<8x128xf32>
    %cst_15 = arith.constant 5.000000e-01 : f32
    %27 = vector.broadcast %cst_15 : f32 to vector<8x128xf32>
    %28 = arith.addf %26, %27 : vector<8x128xf32>
    %cst_16 = arith.constant 5.000000e-01 : f32
    %29 = vector.broadcast %cst_16 : f32 to vector<8x128xf32>
    %30 = arith.mulf %29, %13 : vector<8x128xf32>
    %31 = math.tanh %30 : vector<8x128xf32>
    %cst_17 = arith.constant 5.000000e-01 : f32
    %32 = vector.broadcast %cst_17 : f32 to vector<8x128xf32>
    %33 = arith.mulf %32, %31 : vector<8x128xf32>
    %cst_18 = arith.constant 5.000000e-01 : f32
    %34 = vector.broadcast %cst_18 : f32 to vector<8x128xf32>
    %35 = arith.addf %33, %34 : vector<8x128xf32>
    %c0_19 = arith.constant 0 : index
    %c0_20 = arith.constant 0 : index
    %36 = vector.load %arg3[%c0_19, %c0_20] : memref<8x128xf32, #tpu.memory_space<vmem>>, vector<8x128xf32>
    %37 = arith.mulf %21, %36 : vector<8x128xf32>
    %38 = arith.mulf %28, %14 : vector<8x128xf32>
    %39 = arith.addf %37, %38 : vector<8x128xf32>
    %40 = math.tanh %39 : vector<8x128xf32>
    %41 = arith.mulf %35, %40 : vector<8x128xf32>
    %c0_21 = arith.constant 0 : index
    %c0_22 = arith.constant 0 : index
    %42 = vector.load %arg7[%c0_21, %c0_22] : memref<8x128xf32, #tpu.memory_space<vmem>>, vector<8x128xf32>
    tpu.vector_store %arg7[%c0_21, %c0_22], %41 {strides = array<i32>} : memref<8x128xf32, #tpu.memory_space<vmem>>, vector<8x128xf32>,
    %c0_23 = arith.constant 0 : index
    %c0_24 = arith.constant 0 : index
    %43 = vector.load %arg8[%c0_23, %c0_24] : memref<8x128xf32, #tpu.memory_space<vmem>>, vector<8x128xf32>
    tpu.vector_store %arg8[%c0_23, %c0_24], %39 {strides = array<i32>} : memref<8x128xf32, #tpu.memory_space<vmem>>, vector<8x128xf32>,
    return
  }
  func.func @transform_0(%arg0: i32) -> (i32, i32) {
    %c0_i32 = arith.constant 0 : i32
    %c0_i32_0 = arith.constant 0 : i32
    return %arg0, %c0_i32 : i32, i32
  }
  func.func @transform_1(%arg0: i32) -> (i32, i32) {
    %c0_i32 = arith.constant 0 : i32
    %c0_i32_0 = arith.constant 0 : i32
    return %arg0, %c0_i32 : i32, i32
  }
  func.func @transform_2(%arg0: i32) -> (i32, i32) {
    %c0_i32 = arith.constant 0 : i32
    %c0_i32_0 = arith.constant 0 : i32
    return %arg0, %c0_i32 : i32, i32
  }
  func.func @transform_3(%arg0: i32) -> (i32, i32) {
    %c0_i32 = arith.constant 0 : i32
    %c0_i32_0 = arith.constant 0 : i32
    %c0_i32_1 = arith.constant 0 : i32
    return %c0_i32, %c0_i32_0 : i32, i32
  }
  func.func @transform_4(%arg0: i32) -> (i32, i32) {
    %c0_i32 = arith.constant 0 : i32
    %c0_i32_0 = arith.constant 0 : i32
    %c0_i32_1 = arith.constant 0 : i32
    return %c0_i32, %c0_i32_0 : i32, i32
  }
  func.func @transform_5(%arg0: i32) -> (i32, i32) {
    %c0_i32 = arith.constant 0 : i32
    %c0_i32_0 = arith.constant 0 : i32
    %c0_i32_1 = arith.constant 0 : i32
    return %c0_i32, %c0_i32_0 : i32, i32
  }
  func.func @transform_6(%arg0: i32) -> (i32, i32) {
    %c0_i32 = arith.constant 0 : i32
    %c0_i32_0 = arith.constant 0 : i32
    return %arg0, %c0_i32 : i32, i32
  }
  func.func @transform_7(%arg0: i32) -> (i32, i32) {
    %c0_i32 = arith.constant 0 : i32
    %c0_i32_0 = arith.constant 0 : i32
    return %arg0, %c0_i32 : i32, i32
  }
}

module attributes {stable_mosaic.version = 11 : i64} {
  func.func @lstm_cell_kernel(%arg0: i32, %arg1: memref<8x128xf32, #tpu.memory_space<vmem>>, %arg2: memref<8x128xf32, #tpu.memory_space<vmem>>, %arg3: memref<8x128xf32, #tpu.memory_space<vmem>>, %arg4: memref<128x512xf32, #tpu.memory_space<vmem>>, %arg5: memref<128x512xf32, #tpu.memory_space<vmem>>, %arg6: memref<1x512xf32, #tpu.memory_space<vmem>>, %arg7: memref<8x128xf32, #tpu.memory_space<vmem>>, %arg8: memref<8x128xf32, #tpu.memory_space<vmem>>) attributes {dimension_semantics = [#tpu.dimension_semantics<parallel>], iteration_bounds = array<i64: 2>, scalar_prefetch = 0 : i64, scratch_operands = 0 : i64, tpu.core_type = #tpu.core_type<tc>, window_params = [{transform_indices = @transform_0, window_bounds = array<i64: 8, 128>}, {transform_indices = @transform_1, window_bounds = array<i64: 8, 128>}, {transform_indices = @transform_2, window_bounds = array<i64: 8, 128>}, {pipeline_mode = #tpu.pipeline_mode<synchronous>, transform_indices = @transform_3, window_bounds = array<i64: 128, 512>}, {pipeline_mode = #tpu.pipeline_mode<synchronous>, transform_indices = @transform_4, window_bounds = array<i64: 128, 512>}, {pipeline_mode = #tpu.pipeline_mode<synchronous>, transform_indices = @transform_5, window_bounds = array<i64: 1, 512>}, {transform_indices = @transform_6, window_bounds = array<i64: 8, 128>}, {transform_indices = @transform_7, window_bounds = array<i64: 8, 128>}]} {
    %c0 = arith.constant 0 : index
    %c0_0 = arith.constant 0 : index
    %0 = vector.load %arg1[%c0, %c0_0] : memref<8x128xf32, #tpu.memory_space<vmem>>, vector<8x128xf32>
    %c0_1 = arith.constant 0 : index
    %c0_2 = arith.constant 0 : index
    %1 = vector.load %arg4[%c0_1, %c0_2] : memref<128x512xf32, #tpu.memory_space<vmem>>, vector<128x512xf32>
    %cst = arith.constant dense<0.000000e+00> : vector<8x512xf32>
    %2 = tpu.matmul %0, %1, %cst {dimension_numbers = #tpu.dot_dimension_numbers<[1], [0], [0], [1], [0, 0, 1, 1], [], []>} : vector<8x128xf32>, vector<128x512xf32>, vector<8x512xf32> -> vector<8x512xf32>
    %c0_3 = arith.constant 0 : index
    %c0_4 = arith.constant 0 : index
    %3 = vector.load %arg2[%c0_3, %c0_4] : memref<8x128xf32, #tpu.memory_space<vmem>>, vector<8x128xf32>
    %c0_5 = arith.constant 0 : index
    %c0_6 = arith.constant 0 : index
    %4 = vector.load %arg5[%c0_5, %c0_6] : memref<128x512xf32, #tpu.memory_space<vmem>>, vector<128x512xf32>
    %cst_7 = arith.constant dense<0.000000e+00> : vector<8x512xf32>
    %5 = tpu.matmul %3, %4, %cst_7 {dimension_numbers = #tpu.dot_dimension_numbers<[1], [0], [0], [1], [0, 0, 1, 1], [], []>} : vector<8x128xf32>, vector<128x512xf32>, vector<8x512xf32> -> vector<8x512xf32>
    %6 = arith.addf %2, %5 : vector<8x512xf32>
    %c0_8 = arith.constant 0 : index
    %c0_9 = arith.constant 0 : index
    %7 = vector.load %arg6[%c0_8, %c0_9] : memref<1x512xf32, #tpu.memory_space<vmem>>, vector<1x512xf32>
    %8 = vector.broadcast %7 : vector<1x512xf32> to vector<8x512xf32>
    %9 = arith.addf %6, %8 : vector<8x512xf32>
    %10 = vector.extract_strided_slice %9 {offsets = [0, 0], sizes = [8, 128], strides = [1, 1]} : vector<8x512xf32> to vector<8x128xf32>
    %11 = vector.extract_strided_slice %9 {offsets = [0, 128], sizes = [8, 128], strides = [1, 1]} : vector<8x512xf32> to vector<8x128xf32>
    %12 = vector.extract_strided_slice %9 {offsets = [0, 256], sizes = [8, 128], strides = [1, 1]} : vector<8x512xf32> to vector<8x128xf32>
    %13 = vector.extract_strided_slice %9 {offsets = [0, 384], sizes = [8, 128], strides = [1, 1]} : vector<8x512xf32> to vector<8x128xf32>
    %14 = math.tanh %10 : vector<8x128xf32>
    %cst_10 = arith.constant 5.000000e-01 : f32
    %15 = vector.broadcast %cst_10 : f32 to vector<8x128xf32>
    %16 = arith.mulf %15, %11 : vector<8x128xf32>
    %17 = math.tanh %16 : vector<8x128xf32>
    %cst_11 = arith.constant 5.000000e-01 : f32
    %18 = vector.broadcast %cst_11 : f32 to vector<8x128xf32>
    %19 = arith.mulf %18, %17 : vector<8x128xf32>
    %cst_12 = arith.constant 5.000000e-01 : f32
    %20 = vector.broadcast %cst_12 : f32 to vector<8x128xf32>
    %21 = arith.addf %19, %20 : vector<8x128xf32>
    %cst_13 = arith.constant 5.000000e-01 : f32
    %22 = vector.broadcast %cst_13 : f32 to vector<8x128xf32>
    %23 = arith.mulf %22, %12 : vector<8x128xf32>
    %24 = math.tanh %23 : vector<8x128xf32>
    %cst_14 = arith.constant 5.000000e-01 : f32
    %25 = vector.broadcast %cst_14 : f32 to vector<8x128xf32>
    %26 = arith.mulf %25, %24 : vector<8x128xf32>
    %cst_15 = arith.constant 5.000000e-01 : f32
    %27 = vector.broadcast %cst_15 : f32 to vector<8x128xf32>
    %28 = arith.addf %26, %27 : vector<8x128xf32>
    %cst_16 = arith.constant 5.000000e-01 : f32
    %29 = vector.broadcast %cst_16 : f32 to vector<8x128xf32>
    %30 = arith.mulf %29, %13 : vector<8x128xf32>
    %31 = math.tanh %30 : vector<8x128xf32>
    %cst_17 = arith.constant 5.000000e-01 : f32
    %32 = vector.broadcast %cst_17 : f32 to vector<8x128xf32>
    %33 = arith.mulf %32, %31 : vector<8x128xf32>
    %cst_18 = arith.constant 5.000000e-01 : f32
    %34 = vector.broadcast %cst_18 : f32 to vector<8x128xf32>
    %35 = arith.addf %33, %34 : vector<8x128xf32>
    %c0_19 = arith.constant 0 : index
    %c0_20 = arith.constant 0 : index
    %36 = vector.load %arg3[%c0_19, %c0_20] : memref<8x128xf32, #tpu.memory_space<vmem>>, vector<8x128xf32>
    %37 = arith.mulf %21, %36 : vector<8x128xf32>
    %38 = arith.mulf %28, %14 : vector<8x128xf32>
    %39 = arith.addf %37, %38 : vector<8x128xf32>
    %40 = math.tanh %39 : vector<8x128xf32>
    %41 = arith.mulf %35, %40 : vector<8x128xf32>
    %c0_21 = arith.constant 0 : index
    %c0_22 = arith.constant 0 : index
    %42 = vector.load %arg7[%c0_21, %c0_22] : memref<8x128xf32, #tpu.memory_space<vmem>>, vector<8x128xf32>
    tpu.vector_store %arg7[%c0_21, %c0_22], %41 {strides = array<i32>} : memref<8x128xf32, #tpu.memory_space<vmem>>, vector<8x128xf32>,
    %c0_23 = arith.constant 0 : index
    %c0_24 = arith.constant 0 : index
    %43 = vector.load %arg8[%c0_23, %c0_24] : memref<8x128xf32, #tpu.memory_space<vmem>>, vector<8x128xf32>
    tpu.vector_store %arg8[%c0_23, %c0_24], %39 {strides = array<i32>} : memref<8x128xf32, #tpu.memory_space<vmem>>, vector<8x128xf32>,
    return
  }
  func.func @transform_0(%arg0: i32) -> (i32, i32) {
    %c0_i32 = arith.constant 0 : i32
    %c0_i32_0 = arith.constant 0 : i32
    return %arg0, %c0_i32 : i32, i32
  }
  func.func @transform_1(%arg0: i32) -> (i32, i32) {
    %c0_i32 = arith.constant 0 : i32
    %c0_i32_0 = arith.constant 0 : i32
    return %arg0, %c0_i32 : i32, i32
  }
  func.func @transform_2(%arg0: i32) -> (i32, i32) {
    %c0_i32 = arith.constant 0 : i32
    %c0_i32_0 = arith.constant 0 : i32
    return %arg0, %c0_i32 : i32, i32
  }
  func.func @transform_3(%arg0: i32) -> (i32, i32) {
    %c0_i32 = arith.constant 0 : i32
    %c0_i32_0 = arith.constant 0 : i32
    %c0_i32_1 = arith.constant 0 : i32
    return %c0_i32, %c0_i32_0 : i32, i32
  }
  func.func @transform_4(%arg0: i32) -> (i32, i32) {
    %c0_i32 = arith.constant 0 : i32
    %c0_i32_0 = arith.constant 0 : i32
    %c0_i32_1 = arith.constant 0 : i32
    return %c0_i32, %c0_i32_0 : i32, i32
  }
  func.func @transform_5(%arg0: i32) -> (i32, i32) {
    %c0_i32 = arith.constant 0 : i32
    %c0_i32_0 = arith.constant 0 : i32
    %c0_i32_1 = arith.constant 0 : i32
    return %c0_i32, %c0_i32_0 : i32, i32
  }
  func.func @transform_6(%arg0: i32) -> (i32, i32) {
    %c0_i32 = arith.constant 0 : i32
    %c0_i32_0 = arith.constant 0 : i32
    return %arg0, %c0_i32 : i32, i32
  }
  func.func @transform_7(%arg0: i32) -> (i32, i32) {
    %c0_i32 = arith.constant 0 : i32
    %c0_i32_0 = arith.constant 0 : i32
    return %arg0, %c0_i32 : i32, i32
  }
}

</mosaic_0001>

<bundles_post_ra>
// kernel: tpu_custom_call.1
= control target key start
LH: loop header
LB: loop body
LE: loop exit
PB: predicated region body
PF: predicated region fallthrough
CT: control target
= control target key end

     0   :  { %s1599_s0 = inlined_call_operand.hbm [shape: f32[16,128], index: 0, kind: input, shape index: {}]   ;;  %s1600_s1 = inlined_call_operand.hbm [shape: f32[16,128], index: 1, kind: input, shape index: {}]   ;;  %s1601_s2 = inlined_call_operand.hbm [shape: f32[16,128], index: 2, kind: input, shape index: {}]   ;;  %s1602_s3 = inlined_call_operand.hbm [shape: f32[128,512], index: 3, kind: input, shape index: {}]   ;;  %s1603_s4 = inlined_call_operand.hbm [shape: f32[128,512], index: 4, kind: input, shape index: {}]   ;;  %s1604_s5 = inlined_call_operand.vmem [shape: f32[1,512], index: 5, kind: input, shape index: {}]   ;;  %s1605_s6 = inlined_call_operand.hbm [shape: f32[16,128], index: 6, kind: output, shape index: {0}]   ;;  %s1606_s7 = inlined_call_operand.hbm [shape: f32[16,128], index: 7, kind: output, shape index: {1}]  }
   0x1   :  { %1616 = sst [smem:[#allocation24_spill]] %s1600_s1 }
   0x2   :  { %1617 = sst [smem:[#allocation25_spill]] %s1602_s3 }
   0x3   :  { %13 = vsyncpa [#allocation3], 0 }
   0x4   :  { %15 = vsyncpa [#allocation3 + $0x1], 0 }
   0x5   :  { %16 = vsyncpa [#allocation6], 0 }
   0x6   :  { %18 = vsyncpa [#allocation6 + $0x1], 0 }
   0x7   :  { %19 = vsyncpa [#allocation9], 0 }
   0x8   :  { %20 = vsyncpa [#allocation4], 0 }
   0x9   :  { %22 = vsyncpa [#allocation4 + $0x1], 0 }
   0xa   :  { %23 = vsyncpa [#allocation13], 0 }
   0xb   :  { %25 = vsyncpa [#allocation13 + $0x1], 0  ;;  %s1361_s24 = smov 0   ;;  %s1363_s25 = smov 0  }
   0xc   :  { %s1365_s26 = smov 0   ;;  %s1367_s27 = smov 0  }
   0xd LB: > { %1618 = sst [smem:[#allocation19_spill]] %s1303_s24  ;;  %s1385_s8 = sadd.s32 4294967295, %s1315_s27   ;;  %s1315_s27 = sphi %s1367_s27, %s1640_s27   ;;  %s1311_s26 = sphi %s1365_s26, %s1644_s26   ;;  %s1307_s25 = sphi %s1363_s25, %s1643_s25   ;;  %s1303_s24 = sphi %s1361_s24, %s1642_s24  }
   0xe   : > { %1619 = sst [smem:[#allocation20_spill]] %s1315_s27  ;;  %p941_p0 = scmp.ge.s32.totalorder %s1315_s27, 1 }
   0xf   : > { %s1620_s3 = sld [smem:[#allocation25_spill]]  ;;  %p1615_p1 = scmp.eq.s32.totalorder %s1385_s8, 0 }
  0x10   : > { %p229_p2 = scmp.lt.s32.totalorder %s1315_s27, 3  ;;  %s1317_s10 = smov [#allocation8]  }
  0x11   : > { %s242_s11 = sshll.u32 %s1317_s10, 4  ;;  %s1607_s13 = smov 512   ;;  %s243_s11 = int_to_ptr.vmem [resolvable:$true] %s242_s11 }
  0x12   : > { %p1390_p3 = pnand %p941_p0, %p229_p2  ;;  %s1608_s14 = smov 32  }
  0x13   : > { %s940_s15 = sadd.s32 4294967294, %s1315_s27   ;;  %s1410_s16 = sadd.s32 1, %s1315_s27  }
  0x14   : > { %p983_p4 = pneg %p1390_p3  ;;  %1623 = sst [smem:[#allocation21_spill]] %s1410_s16 }
  0x15   : > { %s240_s30 = sshll.u32 %s1620_s3, 4  ;;  %s38_s17 = sadd.s32 1, %s1311_s26  ;;  %s241_s30 = int_to_ptr.hbm [resolvable:$true] %s240_s30 }
  0x16   : > { %p1399_p6 = pnand %p983_p4, %p1615_p1  ;;  %s35_s18 = ssub.s32 %s1315_s27, %s1410_s16 }
  0x17   : > { %p45_p7 = scmp.ne.s32.totalorder %s1311_s26, %s1307_s25  ;;  %p36_p8 = scmp.eq.s32.totalorder %s35_s18, 0 }
  0x18   : > { %986 = dma.hbm_to_vmem [thread:$0]  (!%p1399_p6), %s241_s30, 8192, %s243_s11, [#allocation9], %s1607_s13, %s1607_s13, %s1608_s14  }
  0x19   : > { %p46_p9 = scmp.eq.s32.totalorder %s1315_s27, 0  ;;  %p51_p10 = scmp.ne.s32.totalorder %s1307_s25, %s1303_s24 }
  0x1a   : > { %p190_p11 = scmp.eq.s32.totalorder %s1385_s8, 1  ;;  %p196_p2 = scmp.eq.s32.totalorder %s940_s15, 1 }
  0x1b   : > { %s1422_s19 = scalar_select %p36_p8, %s1311_s26, %s38_s17  }
  0x1c   : > { %p47_p12 = por %p46_p9, %p45_p7  ;;  %p1426_p13 = por %p1615_p1, %p51_p10 }
  0x1d   : > { %1624 = sst [smem:[#allocation22_spill]] %s1422_s19  ;;  %p1430_p0 = por %p190_p11, %p45_p7 }
  0x1e   : > { %p1009_p4 = scmp.lt.s32.totalorder %s1315_s27, 2  ;;  %s1609_s22 = sand.u32 1, %s1311_s26  }
  0x1f   : > { %p1436_p5 = por %p196_p2, %p51_p10  ;;  %s1442_s28 = sshll.u32 %s1609_s22, 3 }
  0x20   : > { %s1445_s29 = sshll.u32 %s1315_s27, 3  ;;  %p1447_p8 = pnand %p1009_p4, %p47_p12 }
  0x21   : > { %s1627_s23 = scalar_select %p1436_p5, 1, 0 }
  0x22   : > { %s292_s10 = sand.u32 1, %s1315_s27   ;;  %s1630_s1 = sld [smem:[#allocation24_spill]] }
  0x23   : > { %1628 = sst [smem:[#allocation23_spill]] %s1627_s23  ;;  %s296_s18 = scalar_lea.vmem [#allocation5], %s1442_s28 }
  0x24   : > { %s304_s13 = sshll.u32 %s296_s18, 4  ;;  %s254_s19 = sshll.u32 %s1603_s4, 4  ;;  %s305_s13 = int_to_ptr.vmem [resolvable:$true] %s304_s13  ;;  %s255_s19 = int_to_ptr.hbm [resolvable:$true] %s254_s19 }
  0x25   : > { %s1460_s16 = scalar_lea.sflag [#allocation6], %s292_s10  ;;  %p1093_p9 = pneg %p1447_p8 }
  0x28   : > { %s300_s17 = scalar_lea.hbm %s1630_s1, %s1445_s29 }
  0x29   : > { %s302_s14 = sshll.u32 %s300_s17, 4  ;;  %s1096_s17 = scalar_lea.hbm %s1630_s1, 16  ;;  %s303_s14 = int_to_ptr.hbm [resolvable:$true] %s302_s14 }
  0x2a   : > { %s1089_s23 = sshra.s32 %s303_s14, 4  ;;  %s1090_s23 = int_to_ptr.hbm [resolvable:$true] %s1089_s23 }
  0x2b   : > { %s1091_s24 = scalar_lea.hbm %s1090_s23, 8  ;;  %p1097_p12 = scmp.lt.s32.totalorder %s1090_s23, %s1630_s1 }
  0x2c   : > { %p1092_p7 = scmp.ne.s32.totalorder %s1090_s23, %s1091_s24  ;;  %p1098_p2 = scmp.lt.s32.totalorder %s1096_s17, %s1091_s24 }
  0x2e   : > { %p1094_p10 = pnand %p1093_p9, %p1092_p7  ;;  %p1099_p4 = por %p1098_p2, %p1097_p12 }
  0x30   : > { %p1095_p11 = pneg %p1094_p10 }
  0x32   : > { %p1100_p1 = pnand %p1099_p4, %p1095_p11 }
  0x34   : > { %1103 = shalt.err (!%p1100_p1)
}
  0x35   : > { %996 = dma.hbm_to_vmem [thread:$0]  (!%p1447_p8), %s303_s14, 128, %s305_s13, %s1460_s16  }
  0x36   : > { %s1320_s3 = smov [#allocation10]   ;;  %s1631_s27 = smov 32  }
  0x37   : > { %s256_s22 = sshll.u32 %s1320_s3, 4  ;;  %s1632_s23 = smov 512   ;;  %s257_s22 = int_to_ptr.vmem [resolvable:$true] %s256_s22 }
  0x38   : > { %989 = dma.hbm_to_vmem [thread:$0]  (!%p1399_p6), %s255_s19, 8192, %s257_s22, [#allocation9], %s1632_s23, %s1632_s23, %s1631_s27  }
  0x39   : > { %s281_s11 = scalar_lea.hbm %s1599_s0, %s1445_s29  ;;  %s277_s15 = scalar_lea.vmem [#allocation2], %s1442_s28 }
  0x3a   : > { %s285_s17 = sshll.u32 %s277_s15, 4  ;;  %s283_s18 = sshll.u32 %s281_s11, 4  ;;  %s286_s17 = int_to_ptr.vmem [resolvable:$true] %s285_s17  ;;  %s284_s18 = int_to_ptr.hbm [resolvable:$true] %s283_s18 }
  0x3b   : > { %s1633_s13 = sand.u32 1, %s1311_s26   ;;  %s1149_s1 = sshra.s32 %s284_s18, 4  ;;  %s1150_s1 = int_to_ptr.hbm [resolvable:$true] %s1149_s1 }
  0x3c   : > { %s274_s14 = scalar_lea.sflag [#allocation3], %s1633_s13  ;;  %s1151_s3 = scalar_lea.hbm %s1150_s1, 8 }
  0x3d   : > { %p1152_p1 = scmp.ne.s32.totalorder %s1150_s1, %s1151_s3  ;;  %s1156_s22 = scalar_lea.hbm %s1599_s0, 16 }
  0x3e   : > { %p1157_p6 = scmp.lt.s32.totalorder %s1150_s1, %s1599_s0  ;;  %p1158_p11 = scmp.lt.s32.totalorder %s1156_s22, %s1151_s3 }
  0x3f   : > { %p1154_p7 = pnand %p1152_p1, %p1093_p9 }
  0x40   : > { %p1159_p12 = por %p1158_p11, %p1157_p6 }
  0x41   : > { %p1155_p10 = pneg %p1154_p7 }
  0x43   : > { %p1160_p2 = pnand %p1159_p12, %p1155_p10 }
  0x45   : > { %1163 = shalt.err (!%p1160_p2)
}
  0x46   : > { %993 = dma.hbm_to_vmem [thread:$0]  (!%p1447_p8), %s284_s18, 128, %s286_s17, %s274_s14  }
  0x47   : > { %s319_s11 = scalar_lea.hbm %s1601_s2, %s1445_s29  ;;  %s315_s15 = scalar_lea.vmem [#allocation7], %s1442_s28 }
  0x48   : > { %s323_s13 = sshll.u32 %s315_s15, 4  ;;  %s321_s12 = sshll.u32 %s319_s11, 4  ;;  %s324_s13 = int_to_ptr.vmem [resolvable:$true] %s323_s13  ;;  %s322_s12 = int_to_ptr.hbm [resolvable:$true] %s321_s12 }
  0x49   : > { %s1179_s1 = sshra.s32 %s322_s12, 4  ;;  %s1186_s17 = scalar_lea.hbm %s1601_s2, 16  ;;  %s1180_s1 = int_to_ptr.hbm [resolvable:$true] %s1179_s1 }
  0x4a   : > { %s1181_s3 = scalar_lea.hbm %s1180_s1, 8  ;;  %p1187_p10 = scmp.lt.s32.totalorder %s1180_s1, %s1601_s2 }
  0x4b   : > { %p1182_p4 = scmp.ne.s32.totalorder %s1180_s1, %s1181_s3  ;;  %p1188_p6 = scmp.lt.s32.totalorder %s1186_s17, %s1181_s3 }
  0x4d   : > { %p1184_p1 = pnand %p1182_p4, %p1093_p9  ;;  %p1189_p11 = por %p1188_p6, %p1187_p10 }
  0x4f   : > { %p1185_p7 = pneg %p1184_p1 }
  0x51   : > { %p1190_p12 = pnand %p1189_p11, %p1185_p7 }
  0x53   : > { %1193 = shalt.err (!%p1190_p12)
}
  0x54   : > { %999 = dma.hbm_to_vmem [thread:$0]  (!%p1447_p8), %s322_s12, 128, %s324_s13, %s1460_s16  }
  0x55   : > { %332 = sbr.rel (%p1390_p3) target bundleno = 333 (0x14d), region = 44  ;;  %s1519_s28 = sand.u32 (!%p1390_p3), 1, %s1307_s25  }
  0x56   : > { %s1522_s29 = sshll.u32 (!%p1390_p3), %s1519_s28, 3  ;;  %s335_s27 = scalar_lea.sflag (!%p1390_p3), [#allocation3], %s1519_s28 }
  0x57   : > { %s338_s23 = scalar_lea.vmem (!%p1390_p3), [#allocation2], %s1522_s29 }
  0x5a   : > { %1282 = dma.done.wait (%p1426_p13), %s335_s27, 128  }
  0x5b   : > { %1284 = vsyncadd (%p1426_p13), %s335_s27, 4294967168  ;;  %s344_s9 = sand.u32 1, %s1385_s8   ;;  %s348_s30 = scalar_lea.vmem [#allocation5], %s1522_s29 }
  0x5c   : > { %s345_s16 = scalar_lea.sflag [#allocation6], %s344_s9 }
  0x5d   : > { %1286 = dma.done.wait (%p1426_p13), %s345_s16, 256  }
  0x5e   : > { %1288 = vsyncadd (%p1426_p13), %s345_s16, 4294967040  ;;  %s358_s24 = scalar_lea.vmem [#allocation7], %s1522_s29  ;;  %p1634_p3 = scmp.eq.s32.totalorder %s1385_s8, 0 }
  0x60   : > { %1290 = dma.done.wait (%p1634_p3), [#allocation9], 16384   ;;  %p1635_p8 = pmov %p1634_p3 }
  0x61   : > { %v542_v0 = vld [vmem:[#allocation10 + $0x1e8] sm:$0xff]  ;;  %v543_v1 = vld [vmem:[#allocation10 + $0x1f0] sm:$0xff]  ;;  %v544_v4 = vld [vmem:[#allocation10 + $0x1f8] sm:$0xff]  ;;  %s961_s11 = sshll.u32 %s1385_s8, 3  ;;  %s414_s1 = scalar_lea.vmem [#allocation12], %s1522_s29 }
  0x62   : > { %1292 = vsyncadd (%p1635_p8), [#allocation9], 4294950912  ;;  %v538_v2 = vld [vmem:[#allocation10 + $0x1c8] sm:$0xff]  ;;  %565 = vmatpush.msra.mxu1 %v542_v0  ;;  %585 = vmatpush.msra.mxu2 %v543_v1  ;;  %v539_v3 = vld [vmem:[#allocation10 + $0x1d0] sm:$0xff]  ;;  %s770_s12 = scalar_lea.hbm %s1606_s7, %s961_s11  ;;  %s772_s3 = sshll.u32 %s414_s1, 4  ;;  %s773_s3 = int_to_ptr.vmem [resolvable:$true] %s772_s3 }
  0x63   : > { %v541_v5 = vld [vmem:[#allocation10 + $0x1e0] sm:$0xff]  ;;  %605 = vmatpush.msra.mxu3 %v544_v4  ;;  %v534_v6 = vld [vmem:[#allocation10 + $0x1a8] sm:$0xff]  ;;  %v535_v7 = vld [vmem:[#allocation10 + $0x1b0] sm:$0xff]  ;;  %s774_s19 = sshll.u32 %s770_s12, 4  ;;  %s756_s17 = scalar_lea.hbm %s1605_s6, %s961_s11  ;;  %s775_s19 = int_to_ptr.hbm [resolvable:$true] %s774_s19 }
  0x64   : > { %545 = vmatpush.msra.mxu0 %v541_v5  ;;  %v540_v8 = vld [vmem:[#allocation10 + $0x1d8] sm:$0xff]  ;;  %566 = vmatpush.msra.mxu1 %v538_v2  ;;  %v537_v9 = vld [vmem:[#allocation10 + $0x1c0] sm:$0xff]  ;;  %v530_v10 = vld [vmem:[#allocation10 + $0x188] sm:$0xff]  ;;  %s746_s18 = scalar_lea.sflag [#allocation13], %s1519_s28  ;;  %s1223_s14 = sshra.s32 %s775_s19, 4  ;;  %s1224_s14 = int_to_ptr.hbm [resolvable:$true] %s1223_s14 }
  0x65   : > { %586 = vmatpush.msra.mxu2 %v539_v3  ;;  %606 = vmatpush.msra.mxu3 %v540_v8  ;;  %v531_v11 = vld [vmem:[#allocation10 + $0x190] sm:$0xff]  ;;  %v536_v12 = vld [vmem:[#allocation10 + $0x1b8] sm:$0xff]  ;;  %v533_v13 = vld [vmem:[#allocation10 + $0x1a0] sm:$0xff]  ;;  %s1225_s27 = scalar_lea.hbm %s1224_s14, 8  ;;  %s1229_s16 = scalar_lea.hbm %s1606_s7, 16 }
  0x66   : > { %546 = vmatpush.msra.mxu0 %v537_v9  ;;  %567 = vmatpush.msra.mxu1 %v534_v6  ;;  %v532_v14 = vld [vmem:[#allocation10 + $0x198] sm:$0xff]  ;;  %v529_v15 = vld [vmem:[#allocation10 + $0x180] sm:$0xff]  ;;  %v526_v16 = vld [vmem:[#allocation10 + $0x168] sm:$0xff]  ;;  %p1226_p13 = scmp.ne.s32.totalorder %s1224_s14, %s1225_s27  ;;  %p1230_p4 = scmp.lt.s32.totalorder %s1224_s14, %s1606_s7 }
  0x67   : > { %587 = vmatpush.msra.mxu2 %v535_v7  ;;  %607 = vmatpush.msra.mxu3 %v536_v12  ;;  %v527_v17 = vld [vmem:[#allocation10 + $0x170] sm:$0xff]  ;;  %v528_v18 = vld [vmem:[#allocation10 + $0x178] sm:$0xff]  ;;  %v525_v19 = vld [vmem:[#allocation10 + $0x160] sm:$0xff]  ;;  %p1231_p1 = scmp.lt.s32.totalorder %s1229_s16, %s1225_s27 }
  0x68   : > { %547 = vmatpush.msra.mxu0 %v533_v13  ;;  %568 = vmatpush.msra.mxu1 %v530_v10  ;;  %v522_v20 = vld [vmem:[#allocation10 + $0x148] sm:$0xff]  ;;  %v523_v21 = vld [vmem:[#allocation10 + $0x150] sm:$0xff]  ;;  %v524_v22 = vld [vmem:[#allocation10 + $0x158] sm:$0xff]  ;;  %p1227_p9 = pnand %p1226_p13, %p1430_p0 }
  0x69   : > { %588 = vmatpush.msra.mxu2 %v531_v11  ;;  %608 = vmatpush.msra.mxu3 %v532_v14  ;;  %v521_v23 = vld [vmem:[#allocation10 + $0x140] sm:$0xff]  ;;  %v518_v24 = vld [vmem:[#allocation10 + $0x128] sm:$0xff]  ;;  %v519_v25 = vld [vmem:[#allocation10 + $0x130] sm:$0xff]  ;;  %p1232_p7 = por %p1231_p1, %p1230_p4 }
  0x6a   : > { %548 = vmatpush.msra.mxu0 %v529_v15  ;;  %569 = vmatpush.msra.mxu1 %v526_v16  ;;  %v520_v26 = vld [vmem:[#allocation10 + $0x138] sm:$0xff]  ;;  %v517_v27 = vld [vmem:[#allocation10 + $0x120] sm:$0xff]  ;;  %v514_v28 = vld [vmem:[#allocation10 + $0x108] sm:$0xff]  ;;  %p1228_p2 = pneg %p1227_p9 }
  0x6b   : > { %589 = vmatpush.msra.mxu2 %v527_v17  ;;  %609 = vmatpush.msra.mxu3 %v528_v18  ;;  %v515_v29 = vld [vmem:[#allocation10 + $0x110] sm:$0xff]  ;;  %v516_v30 = vld [vmem:[#allocation10 + $0x118] sm:$0xff]  ;;  %v513_v31 = vld [vmem:[#allocation10 + $0x100] sm:$0xff] }
  0x6c   : > { %549 = vmatpush.msra.mxu0 %v525_v19  ;;  %570 = vmatpush.msra.mxu1 %v522_v20  ;;  %v510_v32 = vld [vmem:[#allocation10 + $0xe8] sm:$0xff]  ;;  %v511_v33 = vld [vmem:[#allocation10 + $0xf0] sm:$0xff]  ;;  %v512_v34 = vld [vmem:[#allocation10 + $0xf8] sm:$0xff]  ;;  %p1233_p10 = pnand %p1232_p7, %p1228_p2 }
  0x6d   : > { %590 = vmatpush.msra.mxu2 %v523_v21  ;;  %610 = vmatpush.msra.mxu3 %v524_v22  ;;  %v509_v35 = vld [vmem:[#allocation10 + $0xe0] sm:$0xff]  ;;  %v506_v36 = vld [vmem:[#allocation10 + $0xc8] sm:$0xff]  ;;  %v507_v37 = vld [vmem:[#allocation10 + $0xd0] sm:$0xff] }
  0x6e   : > { %550 = vmatpush.msra.mxu0 %v521_v23  ;;  %571 = vmatpush.msra.mxu1 %v518_v24  ;;  %v508_v38 = vld [vmem:[#allocation10 + $0xd8] sm:$0xff]  ;;  %v505_v39 = vld [vmem:[#allocation10 + $0xc0] sm:$0xff]  ;;  %v502_v40 = vld [vmem:[#allocation10 + $0xa8] sm:$0xff] }
  0x6f   : > { %591 = vmatpush.msra.mxu2 %v519_v25  ;;  %611 = vmatpush.msra.mxu3 %v520_v26  ;;  %v503_v41 = vld [vmem:[#allocation10 + $0xb0] sm:$0xff]  ;;  %v504_v42 = vld [vmem:[#allocation10 + $0xb8] sm:$0xff]  ;;  %v501_v43 = vld [vmem:[#allocation10 + $0xa0] sm:$0xff] }
  0x70   : > { %551 = vmatpush.msra.mxu0 %v517_v27  ;;  %572 = vmatpush.msra.mxu1 %v514_v28  ;;  %v498_v44 = vld [vmem:[#allocation10 + $0x88] sm:$0xff]  ;;  %v499_v45 = vld [vmem:[#allocation10 + $0x90] sm:$0xff]  ;;  %v500_v46 = vld [vmem:[#allocation10 + $0x98] sm:$0xff] }
  0x71   : > { %592 = vmatpush.msra.mxu2 %v515_v29  ;;  %612 = vmatpush.msra.mxu3 %v516_v30  ;;  %v497_v47 = vld [vmem:[#allocation10 + $0x80] sm:$0xff]  ;;  %v494_v48 = vld [vmem:[#allocation10 + $0x68] sm:$0xff]  ;;  %v495_v49 = vld [vmem:[#allocation10 + $0x70] sm:$0xff] }
  0x72   : > { %552 = vmatpush.msra.mxu0 %v513_v31  ;;  %573 = vmatpush.msra.mxu1 %v510_v32  ;;  %v496_v50 = vld [vmem:[#allocation10 + $0x78] sm:$0xff]  ;;  %v493_v51 = vld [vmem:[#allocation10 + $0x60] sm:$0xff]  ;;  %v490_v52 = vld [vmem:[#allocation10 + $0x48] sm:$0xff] }
  0x73   : > { %593 = vmatpush.msra.mxu2 %v511_v33  ;;  %613 = vmatpush.msra.mxu3 %v512_v34  ;;  %v491_v53 = vld [vmem:[#allocation10 + $0x50] sm:$0xff]  ;;  %v492_v54 = vld [vmem:[#allocation10 + $0x58] sm:$0xff]  ;;  %v489_v55 = vld [vmem:[#allocation10 + $0x40] sm:$0xff] }
  0x74   : > { %553 = vmatpush.msra.mxu0 %v509_v35  ;;  %574 = vmatpush.msra.mxu1 %v506_v36  ;;  %v486_v56 = vld [vmem:[#allocation10 + $0x28] sm:$0xff]  ;;  %v487_v57 = vld [vmem:[#allocation10 + $0x30] sm:$0xff]  ;;  %v488_v58 = vld [vmem:[#allocation10 + $0x38] sm:$0xff] }
  0x75   : > { %594 = vmatpush.msra.mxu2 %v507_v37  ;;  %614 = vmatpush.msra.mxu3 %v508_v38  ;;  %v485_v59 = vld [vmem:[#allocation10 + $0x20] sm:$0xff]  ;;  %v482_v60 = vld [vmem:[#allocation10 + $0x8] sm:$0xff]  ;;  %v483_v61 = vld [vmem:[#allocation10 + $0x10] sm:$0xff] }
  0x76   : > { %554 = vmatpush.msra.mxu0 %v505_v39  ;;  %575 = vmatpush.msra.mxu1 %v502_v40  ;;  %v477_v62 = vld [vmem:[#allocation8 + $0x1e8] sm:$0xff]  ;;  %v478_v63 = vld [vmem:[#allocation8 + $0x1f0] sm:$0xff]  ;;  %v484_v0 = vld [vmem:[#allocation10 + $0x18] sm:$0xff] }
  0x77   : > { %595 = vmatpush.msra.mxu2 %v503_v41  ;;  %615 = vmatpush.msra.mxu3 %v504_v42  ;;  %v481_v1 = vld [vmem:[#allocation10] sm:$0xff]  ;;  %v473_v2 = vld [vmem:[#allocation8 + $0x1c8] sm:$0xff]  ;;  %v474_v3 = vld [vmem:[#allocation8 + $0x1d0] sm:$0xff] }
  0x78   : > { %555 = vmatpush.msra.mxu0 %v501_v43  ;;  %576 = vmatpush.msra.mxu1 %v498_v44  ;;  %v479_v4 = vld [vmem:[#allocation8 + $0x1f8] sm:$0xff]  ;;  %v476_v5 = vld [vmem:[#allocation8 + $0x1e0] sm:$0xff]  ;;  %v469_v6 = vld [vmem:[#allocation8 + $0x1a8] sm:$0xff] }
  0x79   : > { %596 = vmatpush.msra.mxu2 %v499_v45  ;;  %616 = vmatpush.msra.mxu3 %v500_v46  ;;  %v470_v7 = vld [vmem:[#allocation8 + $0x1b0] sm:$0xff]  ;;  %v475_v8 = vld [vmem:[#allocation8 + $0x1d8] sm:$0xff]  ;;  %v472_v9 = vld [vmem:[#allocation8 + $0x1c0] sm:$0xff] }
  0x7a   : > { %556 = vmatpush.msra.mxu0 %v497_v47  ;;  %577 = vmatpush.msra.mxu1 %v494_v48  ;;  %v465_v10 = vld [vmem:[#allocation8 + $0x188] sm:$0xff]  ;;  %v466_v11 = vld [vmem:[#allocation8 + $0x190] sm:$0xff]  ;;  %v471_v12 = vld [vmem:[#allocation8 + $0x1b8] sm:$0xff] }
  0x7b   : > { %597 = vmatpush.msra.mxu2 %v495_v49  ;;  %617 = vmatpush.msra.mxu3 %v496_v50  ;;  %v468_v13 = vld [vmem:[#allocation8 + $0x1a0] sm:$0xff]  ;;  %v461_v14 = vld [vmem:[#allocation8 + $0x168] sm:$0xff]  ;;  %v462_v15 = vld [vmem:[#allocation8 + $0x170] sm:$0xff] }
  0x7c   : > { %557 = vmatpush.msra.mxu0 %v493_v51  ;;  %578 = vmatpush.msra.mxu1 %v490_v52  ;;  %v467_v16 = vld [vmem:[#allocation8 + $0x198] sm:$0xff]  ;;  %v464_v17 = vld [vmem:[#allocation8 + $0x180] sm:$0xff]  ;;  %v457_v18 = vld [vmem:[#allocation8 + $0x148] sm:$0xff] }
  0x7d   : > { %598 = vmatpush.msra.mxu2 %v491_v53  ;;  %618 = vmatpush.msra.mxu3 %v492_v54  ;;  %v458_v19 = vld [vmem:[#allocation8 + $0x150] sm:$0xff]  ;;  %v463_v20 = vld [vmem:[#allocation8 + $0x178] sm:$0xff]  ;;  %v460_v21 = vld [vmem:[#allocation8 + $0x160] sm:$0xff] }
  0x7e   : > { %558 = vmatpush.msra.mxu0 %v489_v55  ;;  %579 = vmatpush.msra.mxu1 %v486_v56  ;;  %v453_v22 = vld [vmem:[#allocation8 + $0x128] sm:$0xff]  ;;  %v454_v23 = vld [vmem:[#allocation8 + $0x130] sm:$0xff]  ;;  %v459_v24 = vld [vmem:[#allocation8 + $0x158] sm:$0xff] }
  0x7f   : > { %599 = vmatpush.msra.mxu2 %v487_v57  ;;  %619 = vmatpush.msra.mxu3 %v488_v58  ;;  %v456_v25 = vld [vmem:[#allocation8 + $0x140] sm:$0xff]  ;;  %v449_v26 = vld [vmem:[#allocation8 + $0x108] sm:$0xff]  ;;  %v450_v27 = vld [vmem:[#allocation8 + $0x110] sm:$0xff] }
  0x80   : > { %559 = vmatpush.msra.mxu0 %v485_v59  ;;  %580 = vmatpush.msra.mxu1 %v482_v60  ;;  %v455_v28 = vld [vmem:[#allocation8 + $0x138] sm:$0xff]  ;;  %v452_v29 = vld [vmem:[#allocation8 + $0x120] sm:$0xff]  ;;  %v445_v30 = vld [vmem:[#allocation8 + $0xe8] sm:$0xff] }
  0x81   : > { %600 = vmatpush.msra.mxu2 %v483_v61  ;;  %620 = vmatpush.msra.mxu3 %v484_v0  ;;  %v446_v31 = vld [vmem:[#allocation8 + $0xf0] sm:$0xff]  ;;  %v451_v32 = vld [vmem:[#allocation8 + $0x118] sm:$0xff]  ;;  %v448_v33 = vld [vmem:[#allocation8 + $0x100] sm:$0xff] }
  0x82   : > { %645 = vmatpush.msrb.mxu1 %v477_v62  ;;  %560 = vmatpush.msra.mxu0 %v481_v1  ;;  %v441_v34 = vld [vmem:[#allocation8 + $0xc8] sm:$0xff]  ;;  %v442_v35 = vld [vmem:[#allocation8 + $0xd0] sm:$0xff]  ;;  %v447_v36 = vld [vmem:[#allocation8 + $0xf8] sm:$0xff] }
  0x83   : > { %665 = vmatpush.msrb.mxu2 %v478_v63  ;;  %685 = vmatpush.msrb.mxu3 %v479_v4  ;;  %v444_v37 = vld [vmem:[#allocation8 + $0xe0] sm:$0xff]  ;;  %v437_v38 = vld [vmem:[#allocation8 + $0xa8] sm:$0xff]  ;;  %v438_v39 = vld [vmem:[#allocation8 + $0xb0] sm:$0xff] }
  0x84   : > { %646 = vmatpush.msrb.mxu1 %v473_v2  ;;  %625 = vmatpush.msrb.mxu0 %v476_v5  ;;  %v443_v40 = vld [vmem:[#allocation8 + $0xd8] sm:$0xff]  ;;  %v440_v41 = vld [vmem:[#allocation8 + $0xc0] sm:$0xff]  ;;  %v433_v42 = vld [vmem:[#allocation8 + $0x88] sm:$0xff] }
  0x85   : > { %666 = vmatpush.msrb.mxu2 %v474_v3  ;;  %686 = vmatpush.msrb.mxu3 %v475_v8  ;;  %v434_v43 = vld [vmem:[#allocation8 + $0x90] sm:$0xff]  ;;  %v480_v44 = vld [vmem:[%s348_s30] sm:$0xff]  ;;  %v439_v45 = vld [vmem:[#allocation8 + $0xb8] sm:$0xff] }
  0x86   : > { %647 = vmatpush.msrb.mxu1 %v469_v6  ;;  %626 = vmatpush.msrb.mxu0 %v472_v9  ;;  %v436_v46 = vld [vmem:[#allocation8 + $0xa0] sm:$0xff]  ;;  %v429_v47 = vld [vmem:[#allocation8 + $0x68] sm:$0xff]  ;;  %v430_v48 = vld [vmem:[#allocation8 + $0x70] sm:$0xff] }
  0x87   : > { %667 = vmatpush.msrb.mxu2 %v470_v7  ;;  %687 = vmatpush.msrb.mxu3 %v471_v12  ;;  %v435_v49 = vld [vmem:[#allocation8 + $0x98] sm:$0xff]  ;;  %v432_v50 = vld [vmem:[#allocation8 + $0x80] sm:$0xff]  ;;  %v425_v51 = vld [vmem:[#allocation8 + $0x48] sm:$0xff] }
  0x88   : > { %648 = vmatpush.msrb.mxu1 %v465_v10  ;;  %627 = vmatpush.msrb.mxu0 %v468_v13  ;;  %v426_v52 = vld [vmem:[#allocation8 + $0x50] sm:$0xff]  ;;  %v431_v53 = vld [vmem:[#allocation8 + $0x78] sm:$0xff]  ;;  %v428_v54 = vld [vmem:[#allocation8 + $0x60] sm:$0xff] }
  0x89   : > { %668 = vmatpush.msrb.mxu2 %v466_v11  ;;  %688 = vmatpush.msrb.mxu3 %v467_v16  ;;  %v421_v55 = vld [vmem:[#allocation8 + $0x28] sm:$0xff]  ;;  %v422_v56 = vld [vmem:[#allocation8 + $0x30] sm:$0xff]  ;;  %v427_v57 = vld [vmem:[#allocation8 + $0x58] sm:$0xff] }
  0x8a   : > { %649 = vmatpush.msrb.mxu1 %v461_v14  ;;  %628 = vmatpush.msrb.mxu0 %v464_v17  ;;  %v424_v58 = vld [vmem:[#allocation8 + $0x40] sm:$0xff]  ;;  %v417_v59 = vld [vmem:[#allocation8 + $0x8] sm:$0xff]  ;;  %v418_v60 = vld [vmem:[#allocation8 + $0x10] sm:$0xff] }
  0x8b   : > { %669 = vmatpush.msrb.mxu2 %v462_v15  ;;  %689 = vmatpush.msrb.mxu3 %v463_v20  ;;  %v415_v61 = vld [vmem:[%s338_s23] sm:$0xff]  ;;  %v420_v63 = vld [vmem:[#allocation8 + $0x20] sm:$0xff] }
  0x8c   : > { %650 = vmatpush.msrb.mxu1 %v457_v18  ;;  %629 = vmatpush.msrb.mxu0 %v460_v21  ;;  %v423_v62 = vld [vmem:[#allocation8 + $0x38] sm:$0xff]  ;;  %v416_v1 = vld [vmem:[#allocation8] sm:$0xff]  ;;  %v705_v5 = vld [vmem:[%s1604_s5] sm:$0xf] }
  0x8d   : > { %670 = vmatpush.msrb.mxu2 %v458_v19  ;;  %690 = vmatpush.msrb.mxu3 %v459_v24  ;;  %v419_v0 = vld [vmem:[#allocation8 + $0x18] sm:$0xff]  ;;  %v708_v6 = vperm.slane %v705_v5, 1  ;;  %v709_v12 = vperm.slane %v705_v5, 2  ;;  %v707_v17 = vperm.slane %v705_v5, 0  ;;  %v710_v19 = vperm.slane %v705_v5, 3 }
  0x8e   : > { %651 = vmatpush.msrb.mxu1 %v453_v22  ;;  %630 = vmatpush.msrb.mxu0 %v456_v25 }
  0x8f   : > { %671 = vmatpush.msrb.mxu2 %v454_v23  ;;  %691 = vmatpush.msrb.mxu3 %v455_v28 }
  0x90   : > { %652 = vmatpush.msrb.mxu1 %v449_v26  ;;  %631 = vmatpush.msrb.mxu0 %v452_v29 }
  0x91   : > { %672 = vmatpush.msrb.mxu2 %v450_v27  ;;  %692 = vmatpush.msrb.mxu3 %v451_v32 }
  0x92   : > { %653 = vmatpush.msrb.mxu1 %v445_v30  ;;  %632 = vmatpush.msrb.mxu0 %v448_v33 }
  0x93   : > { %673 = vmatpush.msrb.mxu2 %v446_v31  ;;  %693 = vmatpush.msrb.mxu3 %v447_v36  ;;  %v732_v31 = vld [vmem:[%s358_s24] sm:$0xff] }
  0x94   : > { %654 = vmatpush.msrb.mxu1 %v441_v34  ;;  %633 = vmatpush.msrb.mxu0 %v444_v37 }
  0x95   : > { %674 = vmatpush.msrb.mxu2 %v442_v35  ;;  %694 = vmatpush.msrb.mxu3 %v443_v40 }
  0x96   : > { %655 = vmatpush.msrb.mxu1 %v437_v38  ;;  %634 = vmatpush.msrb.mxu0 %v440_v41 }
  0x97   : > { %675 = vmatpush.msrb.mxu2 %v438_v39  ;;  %581 = vmatmul.f32.vlgmr.msra.gmra.mxu1 %v480_v44 }
  0x98   : > { %656 = vmatpush.msrb.mxu1 %v433_v42  ;;  %601 = vmatmul.f32.vlgmr.msra.gmra.mxu2 %v480_v44 }
  0x99   : > { %676 = vmatpush.msrb.mxu2 %v434_v43  ;;  %695 = vmatpush.msrb.mxu3 %v439_v45 }
  0x9a   : > { %635 = vmatpush.msrb.mxu0 %v436_v46  ;;  %657 = vmatpush.msrb.mxu1 %v429_v47 }
  0x9b   : > { %677 = vmatpush.msrb.mxu2 %v430_v48  ;;  %696 = vmatpush.msrb.mxu3 %v435_v49 }
  0x9c   : > { %636 = vmatpush.msrb.mxu0 %v432_v50  ;;  %621 = vmatmul.f32.vlgmr.msra.gmra.mxu3 %v480_v44 }
  0x9d   : > { %658 = vmatpush.msrb.mxu1 %v425_v51  ;;  %678 = vmatpush.msrb.mxu2 %v426_v52 }
  0x9e   : > { %561 = vmatmul.f32.vlgmr.msra.gmra.mxu0 %v480_v44  ;;  %697 = vmatpush.msrb.mxu3 %v431_v53 }
  0x9f   : > { %637 = vmatpush.msrb.mxu0 %v428_v54  ;;  %659 = vmatpush.msrb.mxu1 %v421_v55 }
  0xa0   : > { %679 = vmatpush.msrb.mxu2 %v422_v56  ;;  %698 = vmatpush.msrb.mxu3 %v427_v57 }
  0xa1   : > { %638 = vmatpush.msrb.mxu0 %v424_v58  ;;  %660 = vmatpush.msrb.mxu1 %v417_v59 }
  0xa2   : > { %680 = vmatpush.msrb.mxu2 %v418_v60  ;;  %661 = vmatmul.f32.vlgmr.msrb.gmra.mxu1 %v415_v61 }
  0xa3   : > { %681 = vmatmul.f32.vlgmr.msrb.gmra.mxu2 %v415_v61  ;;  %699 = vmatpush.msrb.mxu3 %v423_v62 }
  0xa4   : > { %639 = vmatpush.msrb.mxu0 %v420_v63 }
  0xa5   : > { %700 = vmatpush.msrb.mxu3 %v419_v0 }
  0xa6   : > { %640 = vmatpush.msrb.mxu0 %v416_v1  ;;  %701 = vmatmul.f32.vlgmr.msrb.gmra.mxu3 %v415_v61 }
  0xa7   : > { %641 = vmatmul.f32.vlgmr.msrb.gmra.mxu0 %v415_v61 }
 0x114   : > { %v582_v2 = vpop.f32.mrf.mxu1 }
 0x11b   : > { %v562_v3 = vpop.f32.mrf.mxu0  ;;  %v602_v4 = vpop.f32.mrf.mxu2 }
 0x11f   : > { %v662_v7 = vpop.f32.mrf.mxu1  ;;  %v622_v8 = vpop.f32.mrf.mxu3 }
 0x120   : > { %v663_v9 = vadd.f32 %v662_v7, %v582_v2 }
 0x122   : > { %v716_v10 = vadd.f32 %v708_v6, %v663_v9 }
 0x124   : > { %v720_v11 = vmul.f32 0.5, %v716_v10  ;;  %v642_v13 = vpop.f32.mrf.mxu0 }
 0x125   : > { %v643_v16 = vadd.f32 %v642_v13, %v562_v3 }
 0x126   : > { %v682_v14 = vpop.f32.mrf.mxu2  ;;  %1049 = vtanh.f32 %v720_v11 }
 0x127   : > { %v683_v15 = vadd.f32 %v682_v14, %v602_v4  ;;  %v715_v24 = vadd.f32 %v707_v17, %v643_v16 }
 0x129   : > { %v717_v18 = vadd.f32 %v709_v12, %v683_v15  ;;  %v702_v20 = vpop.f32.mrf.mxu3 }
 0x12a   : > { %v703_v22 = vadd.f32 %v702_v20, %v622_v8 }
 0x12b   : > { %v724_v21 = vmul.f32 0.5, %v717_v18 }
 0x12c   : > { %v1050_v23 = vpop.eup %1049  ;;  %v718_v25 = vadd.f32 %v710_v19, %v703_v22 }
 0x12d   : > { %1051 = vtanh.f32 %v724_v21  ;;  %v722_v26 = vmul.f32 0.5, %v1050_v23 }
 0x12e   : > { %v728_v27 = vmul.f32 0.5, %v718_v25  ;;  %1053 = vtanh.f32 %v715_v24 }
 0x12f   : > { %v723_v29 = vadd.f32 0.5, %v722_v26 }
 0x130   : > { %1055 = vtanh.f32 %v728_v27 }
 0x131   : > { %v733_v34 = vmul.f32 %v732_v31, %v723_v29 }
 0x133   : > { %v1052_v28 = vpop.eup %1051 }
 0x134   : > { %v726_v30 = vmul.f32 0.5, %v1052_v28  ;;  %v1054_v33 = vpop.eup %1053 }
 0x136   : > { %v727_v32 = vadd.f32 0.5, %v726_v30  ;;  %v1056_v36 = vpop.eup %1055 }
 0x137   : > { %v730_v38 = vmul.f32 0.5, %v1056_v36 }
 0x138   : > { %v734_v35 = vmul.f32 %v1054_v33, %v727_v32 }
 0x13a   : > { %v735_v37 = vadd.f32 %v734_v35, %v733_v34 }
 0x13c   : > { %1057 = vtanh.f32 %v735_v37  ;;  %739 = vst [vmem:[%s414_s1] sm:$0xff] %v735_v37 }
 0x13d   : > { %1236 = shalt.err (!%p1233_p10)
}
 0x13e   : > { %980 = dma.vmem_to_hbm [thread:$0]  (%p1430_p0), %s773_s3, 128, %s775_s19, %s746_s18   ;;  %v731_v39 = vadd.f32 0.5, %v730_v38 }
 0x13f   : > { %s407_s20 = scalar_lea.vmem [#allocation11], %s1522_s29  ;;  %s760_s11 = sshll.u32 %s756_s17, 4  ;;  %s761_s11 = int_to_ptr.hbm [resolvable:$true] %s760_s11 }
 0x140   : > { %s758_s10 = sshll.u32 %s407_s20, 4  ;;  %s741_s15 = scalar_lea.sflag [#allocation4], %s1519_s28  ;;  %s759_s10 = int_to_ptr.vmem [resolvable:$true] %s758_s10 }
 0x141   : > { %s1251_s13 = sshra.s32 %s761_s11, 4  ;;  %s1257_s29 = scalar_lea.hbm %s1605_s6, 16  ;;  %s1252_s13 = int_to_ptr.hbm [resolvable:$true] %s1251_s13 }
 0x142   : > { %v1058_v40 = vpop.eup %1057  ;;  %s1253_s12 = scalar_lea.hbm %s1252_s13, 8  ;;  %p1258_p3 = scmp.lt.s32.totalorder %s1252_s13, %s1605_s6 }
 0x143   : > { %v737_v41 = vmul.f32 %v1058_v40, %v731_v39  ;;  %p1254_p6 = scmp.ne.s32.totalorder %s1252_s13, %s1253_s12  ;;  %p1259_p8 = scmp.lt.s32.totalorder %s1257_s29, %s1253_s12 }
 0x145   : > { %738 = vst [vmem:[%s407_s20] sm:$0xff] %v737_v41  ;;  %p1255_p11 = pnand %p1254_p6, %p1430_p0  ;;  %p1260_p13 = por %p1259_p8, %p1258_p3 }
 0x147   : > { %p1256_p12 = pneg %p1255_p11 }
 0x149   : > { %p1261_p9 = pnand %p1260_p13, %p1256_p12 }
 0x14b   : > { %1264 = shalt.err (!%p1261_p9)
}
 0x14c   : > { %979 = dma.vmem_to_hbm [thread:$0]  (%p1430_p0), %s759_s10, 128, %s761_s11, %s741_s15  }
 0x14d PF: > { %s1636_s28 = sld [smem:[#allocation19_spill]] }
 0x14e   : > { %s1638_s17 = sld [smem:[#allocation20_spill]] }
 0x153   : > { %s786_s18 = sand.u32 1, %s1636_s28  }
 0x154   : > { %p1639_p2 = scmp.ge.s32.totalorder %s1638_s17, 2  ;;  %s787_s14 = scalar_lea.sflag [#allocation4], %s786_s18 }
 0x156   : > { %p1001_p4 = pnand %p1639_p2, %p1436_p5 }
 0x158   : > { %p1002_p1 = pneg %p1001_p4 }
 0x15a   : > { %1294 = dma.done.wait (%p1002_p1), %s787_s14, 128  }
 0x15b   : > { %1296 = vsyncadd (%p1002_p1), %s787_s14, 4294967168  ;;  %s797_s27 = scalar_lea.sflag [#allocation13], %s786_s18 }
 0x15c   : > { %1298 = dma.done.wait (%p1002_p1), %s797_s27, 128  }
 0x15d   : > { %1300 = vsyncadd (%p1002_p1), %s797_s27, 4294967168  ;;  %s1640_s27 = sld [smem:[#allocation21_spill]]  ;;  %s1642_s24 = smov %s1307_s25 }
 0x15e   : > { %s1641_s21 = sld [smem:[#allocation22_spill]]  ;;  %s1643_s25 = smov %s1311_s26 }
 0x163   : > { %p28_p0 = scmp.ge.s32.totalorder %s1640_s27, 4  }
 0x164   : > { %s1644_s26 = smov %s1641_s21 }
 0x165   :  { %30 = sbr.rel (!%p28_p0) target bundleno = 13 (0xd), region = 138 }
 0x16a   :  { %803 = vsyncpa [#allocation3], 1 }
 0x16b   :  { %805 = vsyncpa [#allocation3 + $0x1], 1 }
 0x16c   :  { %806 = vsyncpa [#allocation6], 1 }
 0x16d   :  { %808 = vsyncpa [#allocation6 + $0x1], 1 }
 0x16e   :  { %809 = vsyncpa [#allocation9], 1 }
 0x16f   :  { %810 = vsyncpa [#allocation4], 1 }
 0x170   :  { %812 = vsyncpa [#allocation4 + $0x1], 1 }
 0x171   :  { %813 = vsyncpa [#allocation13], 1 }
 0x172   :  { %815 = vsyncpa [#allocation13 + $0x1], 1 }

// kernel: tpu_custom_call.1
= control target key start
LH: loop header
LB: loop body
LE: loop exit
PB: predicated region body
PF: predicated region fallthrough
CT: control target
= control target key end

     0   :  { %s1599_s0 = inlined_call_operand.hbm [shape: f32[16,128], index: 0, kind: input, shape index: {}]   ;;  %s1600_s1 = inlined_call_operand.hbm [shape: f32[16,128], index: 1, kind: input, shape index: {}]   ;;  %s1601_s2 = inlined_call_operand.hbm [shape: f32[16,128], index: 2, kind: input, shape index: {}]   ;;  %s1602_s3 = inlined_call_operand.hbm [shape: f32[128,512], index: 3, kind: input, shape index: {}]   ;;  %s1603_s4 = inlined_call_operand.hbm [shape: f32[128,512], index: 4, kind: input, shape index: {}]   ;;  %s1604_s5 = inlined_call_operand.vmem [shape: f32[1,512], index: 5, kind: input, shape index: {}]   ;;  %s1605_s6 = inlined_call_operand.hbm [shape: f32[16,128], index: 6, kind: output, shape index: {0}]   ;;  %s1606_s7 = inlined_call_operand.hbm [shape: f32[16,128], index: 7, kind: output, shape index: {1}]  }
   0x1   :  { %1616 = sst [smem:[#allocation24_spill]] %s1600_s1 }
   0x2   :  { %1617 = sst [smem:[#allocation25_spill]] %s1602_s3 }
   0x3   :  { %13 = vsyncpa [#allocation3], 0 }
   0x4   :  { %15 = vsyncpa [#allocation3 + $0x1], 0 }
   0x5   :  { %16 = vsyncpa [#allocation6], 0 }
   0x6   :  { %18 = vsyncpa [#allocation6 + $0x1], 0 }
   0x7   :  { %19 = vsyncpa [#allocation9], 0 }
   0x8   :  { %20 = vsyncpa [#allocation4], 0 }
   0x9   :  { %22 = vsyncpa [#allocation4 + $0x1], 0 }
   0xa   :  { %23 = vsyncpa [#allocation13], 0 }
   0xb   :  { %25 = vsyncpa [#allocation13 + $0x1], 0  ;;  %s1361_s24 = smov 0   ;;  %s1363_s25 = smov 0  }
   0xc   :  { %s1365_s26 = smov 0   ;;  %s1367_s27 = smov 0  }
   0xd LB: > { %1618 = sst [smem:[#allocation19_spill]] %s1303_s24  ;;  %s1385_s8 = sadd.s32 4294967295, %s1315_s27   ;;  %s1315_s27 = sphi %s1367_s27, %s1640_s27   ;;  %s1311_s26 = sphi %s1365_s26, %s1644_s26   ;;  %s1307_s25 = sphi %s1363_s25, %s1643_s25   ;;  %s1303_s24 = sphi %s1361_s24, %s1642_s24  }
   0xe   : > { %1619 = sst [smem:[#allocation20_spill]] %s1315_s27  ;;  %p941_p0 = scmp.ge.s32.totalorder %s1315_s27, 1 }
   0xf   : > { %s1620_s3 = sld [smem:[#allocation25_spill]]  ;;  %p1615_p1 = scmp.eq.s32.totalorder %s1385_s8, 0 }
  0x10   : > { %p229_p2 = scmp.lt.s32.totalorder %s1315_s27, 3  ;;  %s1317_s10 = smov [#allocation8]  }
  0x11   : > { %s242_s11 = sshll.u32 %s1317_s10, 4  ;;  %s1607_s13 = smov 512   ;;  %s243_s11 = int_to_ptr.vmem [resolvable:$true] %s242_s11 }
  0x12   : > { %p1390_p3 = pnand %p941_p0, %p229_p2  ;;  %s1608_s14 = smov 32  }
  0x13   : > { %s940_s15 = sadd.s32 4294967294, %s1315_s27   ;;  %s1410_s16 = sadd.s32 1, %s1315_s27  }
  0x14   : > { %p983_p4 = pneg %p1390_p3  ;;  %1623 = sst [smem:[#allocation21_spill]] %s1410_s16 }
  0x15   : > { %s240_s30 = sshll.u32 %s1620_s3, 4  ;;  %s38_s17 = sadd.s32 1, %s1311_s26  ;;  %s241_s30 = int_to_ptr.hbm [resolvable:$true] %s240_s30 }
  0x16   : > { %p1399_p6 = pnand %p983_p4, %p1615_p1  ;;  %s35_s18 = ssub.s32 %s1315_s27, %s1410_s16 }
  0x17   : > { %p45_p7 = scmp.ne.s32.totalorder %s1311_s26, %s1307_s25  ;;  %p36_p8 = scmp.eq.s32.totalorder %s35_s18, 0 }
  0x18   : > { %986 = dma.hbm_to_vmem [thread:$0]  (!%p1399_p6), %s241_s30, 8192, %s243_s11, [#allocation9], %s1607_s13, %s1607_s13, %s1608_s14  }
  0x19   : > { %p46_p9 = scmp.eq.s32.totalorder %s1315_s27, 0  ;;  %p51_p10 = scmp.ne.s32.totalorder %s1307_s25, %s1303_s24 }
  0x1a   : > { %p190_p11 = scmp.eq.s32.totalorder %s1385_s8, 1  ;;  %p196_p2 = scmp.eq.s32.totalorder %s940_s15, 1 }
  0x1b   : > { %s1422_s19 = scalar_select %p36_p8, %s1311_s26, %s38_s17  }
  0x1c   : > { %p47_p12 = por %p46_p9, %p45_p7  ;;  %p1426_p13 = por %p1615_p1, %p51_p10 }
  0x1d   : > { %1624 = sst [smem:[#allocation22_spill]] %s1422_s19  ;;  %p1430_p0 = por %p190_p11, %p45_p7 }
  0x1e   : > { %p1009_p4 = scmp.lt.s32.totalorder %s1315_s27, 2  ;;  %s1609_s22 = sand.u32 1, %s1311_s26  }
  0x1f   : > { %p1436_p5 = por %p196_p2, %p51_p10  ;;  %s1442_s28 = sshll.u32 %s1609_s22, 3 }
  0x20   : > { %s1445_s29 = sshll.u32 %s1315_s27, 3  ;;  %p1447_p8 = pnand %p1009_p4, %p47_p12 }
  0x21   : > { %s1627_s23 = scalar_select %p1436_p5, 1, 0 }
  0x22   : > { %s292_s10 = sand.u32 1, %s1315_s27   ;;  %s1630_s1 = sld [smem:[#allocation24_spill]] }
  0x23   : > { %1628 = sst [smem:[#allocation23_spill]] %s1627_s23  ;;  %s296_s18 = scalar_lea.vmem [#allocation5], %s1442_s28 }
  0x24   : > { %s304_s13 = sshll.u32 %s296_s18, 4  ;;  %s254_s19 = sshll.u32 %s1603_s4, 4  ;;  %s305_s13 = int_to_ptr.vmem [resolvable:$true] %s304_s13  ;;  %s255_s19 = int_to_ptr.hbm [resolvable:$true] %s254_s19 }
  0x25   : > { %s1460_s16 = scalar_lea.sflag [#allocation6], %s292_s10  ;;  %p1093_p9 = pneg %p1447_p8 }
  0x28   : > { %s300_s17 = scalar_lea.hbm %s1630_s1, %s1445_s29 }
  0x29   : > { %s302_s14 = sshll.u32 %s300_s17, 4  ;;  %s1096_s17 = scalar_lea.hbm %s1630_s1, 16  ;;  %s303_s14 = int_to_ptr.hbm [resolvable:$true] %s302_s14 }
  0x2a   : > { %s1089_s23 = sshra.s32 %s303_s14, 4  ;;  %s1090_s23 = int_to_ptr.hbm [resolvable:$true] %s1089_s23 }
  0x2b   : > { %s1091_s24 = scalar_lea.hbm %s1090_s23, 8  ;;  %p1097_p12 = scmp.lt.s32.totalorder %s1090_s23, %s1630_s1 }
  0x2c   : > { %p1092_p7 = scmp.ne.s32.totalorder %s1090_s23, %s1091_s24  ;;  %p1098_p2 = scmp.lt.s32.totalorder %s1096_s17, %s1091_s24 }
  0x2e   : > { %p1094_p10 = pnand %p1093_p9, %p1092_p7  ;;  %p1099_p4 = por %p1098_p2, %p1097_p12 }
  0x30   : > { %p1095_p11 = pneg %p1094_p10 }
  0x32   : > { %p1100_p1 = pnand %p1099_p4, %p1095_p11 }
  0x34   : > { %1103 = shalt.err (!%p1100_p1)
}
  0x35   : > { %996 = dma.hbm_to_vmem [thread:$0]  (!%p1447_p8), %s303_s14, 128, %s305_s13, %s1460_s16  }
  0x36   : > { %s1320_s3 = smov [#allocation10]   ;;  %s1631_s27 = smov 32  }
  0x37   : > { %s256_s22 = sshll.u32 %s1320_s3, 4  ;;  %s1632_s23 = smov 512   ;;  %s257_s22 = int_to_ptr.vmem [resolvable:$true] %s256_s22 }
  0x38   : > { %989 = dma.hbm_to_vmem [thread:$0]  (!%p1399_p6), %s255_s19, 8192, %s257_s22, [#allocation9], %s1632_s23, %s1632_s23, %s1631_s27  }
  0x39   : > { %s281_s11 = scalar_lea.hbm %s1599_s0, %s1445_s29  ;;  %s277_s15 = scalar_lea.vmem [#allocation2], %s1442_s28 }
  0x3a   : > { %s285_s17 = sshll.u32 %s277_s15, 4  ;;  %s283_s18 = sshll.u32 %s281_s11, 4  ;;  %s286_s17 = int_to_ptr.vmem [resolvable:$true] %s285_s17  ;;  %s284_s18 = int_to_ptr.hbm [resolvable:$true] %s283_s18 }
  0x3b   : > { %s1633_s13 = sand.u32 1, %s1311_s26   ;;  %s1149_s1 = sshra.s32 %s284_s18, 4  ;;  %s1150_s1 = int_to_ptr.hbm [resolvable:$true] %s1149_s1 }
  0x3c   : > { %s274_s14 = scalar_lea.sflag [#allocation3], %s1633_s13  ;;  %s1151_s3 = scalar_lea.hbm %s1150_s1, 8 }
  0x3d   : > { %p1152_p1 = scmp.ne.s32.totalorder %s1150_s1, %s1151_s3  ;;  %s1156_s22 = scalar_lea.hbm %s1599_s0, 16 }
  0x3e   : > { %p1157_p6 = scmp.lt.s32.totalorder %s1150_s1, %s1599_s0  ;;  %p1158_p11 = scmp.lt.s32.totalorder %s1156_s22, %s1151_s3 }
  0x3f   : > { %p1154_p7 = pnand %p1152_p1, %p1093_p9 }
  0x40   : > { %p1159_p12 = por %p1158_p11, %p1157_p6 }
  0x41   : > { %p1155_p10 = pneg %p1154_p7 }
  0x43   : > { %p1160_p2 = pnand %p1159_p12, %p1155_p10 }
  0x45   : > { %1163 = shalt.err (!%p1160_p2)
}
  0x46   : > { %993 = dma.hbm_to_vmem [thread:$0]  (!%p1447_p8), %s284_s18, 128, %s286_s17, %s274_s14  }
  0x47   : > { %s319_s11 = scalar_lea.hbm %s1601_s2, %s1445_s29  ;;  %s315_s15 = scalar_lea.vmem [#allocation7], %s1442_s28 }
  0x48   : > { %s323_s13 = sshll.u32 %s315_s15, 4  ;;  %s321_s12 = sshll.u32 %s319_s11, 4  ;;  %s324_s13 = int_to_ptr.vmem [resolvable:$true] %s323_s13  ;;  %s322_s12 = int_to_ptr.hbm [resolvable:$true] %s321_s12 }
  0x49   : > { %s1179_s1 = sshra.s32 %s322_s12, 4  ;;  %s1186_s17 = scalar_lea.hbm %s1601_s2, 16  ;;  %s1180_s1 = int_to_ptr.hbm [resolvable:$true] %s1179_s1 }
  0x4a   : > { %s1181_s3 = scalar_lea.hbm %s1180_s1, 8  ;;  %p1187_p10 = scmp.lt.s32.totalorder %s1180_s1, %s1601_s2 }
  0x4b   : > { %p1182_p4 = scmp.ne.s32.totalorder %s1180_s1, %s1181_s3  ;;  %p1188_p6 = scmp.lt.s32.totalorder %s1186_s17, %s1181_s3 }
  0x4d   : > { %p1184_p1 = pnand %p1182_p4, %p1093_p9  ;;  %p1189_p11 = por %p1188_p6, %p1187_p10 }
  0x4f   : > { %p1185_p7 = pneg %p1184_p1 }
  0x51   : > { %p1190_p12 = pnand %p1189_p11, %p1185_p7 }
  0x53   : > { %1193 = shalt.err (!%p1190_p12)
}
  0x54   : > { %999 = dma.hbm_to_vmem [thread:$0]  (!%p1447_p8), %s322_s12, 128, %s324_s13, %s1460_s16  }
  0x55   : > { %332 = sbr.rel (%p1390_p3) target bundleno = 333 (0x14d), region = 44  ;;  %s1519_s28 = sand.u32 (!%p1390_p3), 1, %s1307_s25  }
  0x56   : > { %s1522_s29 = sshll.u32 (!%p1390_p3), %s1519_s28, 3  ;;  %s335_s27 = scalar_lea.sflag (!%p1390_p3), [#allocation3], %s1519_s28 }
  0x57   : > { %s338_s23 = scalar_lea.vmem (!%p1390_p3), [#allocation2], %s1522_s29 }
  0x5a   : > { %1282 = dma.done.wait (%p1426_p13), %s335_s27, 128  }
  0x5b   : > { %1284 = vsyncadd (%p1426_p13), %s335_s27, 4294967168  ;;  %s344_s9 = sand.u32 1, %s1385_s8   ;;  %s348_s30 = scalar_lea.vmem [#allocation5], %s1522_s29 }
  0x5c   : > { %s345_s16 = scalar_lea.sflag [#allocation6], %s344_s9 }
  0x5d   : > { %1286 = dma.done.wait (%p1426_p13), %s345_s16, 256  }
  0x5e   : > { %1288 = vsyncadd (%p1426_p13), %s345_s16, 4294967040  ;;  %s358_s24 = scalar_lea.vmem [#allocation7], %s1522_s29  ;;  %p1634_p3 = scmp.eq.s32.totalorder %s1385_s8, 0 }
  0x60   : > { %1290 = dma.done.wait (%p1634_p3), [#allocation9], 16384   ;;  %p1635_p8 = pmov %p1634_p3 }
  0x61   : > { %v542_v0 = vld [vmem:[#allocation10 + $0x1e8] sm:$0xff]  ;;  %v543_v1 = vld [vmem:[#allocation10 + $0x1f0] sm:$0xff]  ;;  %v544_v4 = vld [vmem:[#allocation10 + $0x1f8] sm:$0xff]  ;;  %s961_s11 = sshll.u32 %s1385_s8, 3  ;;  %s414_s1 = scalar_lea.vmem [#allocation12], %s1522_s29 }
  0x62   : > { %1292 = vsyncadd (%p1635_p8), [#allocation9], 4294950912  ;;  %v538_v2 = vld [vmem:[#allocation10 + $0x1c8] sm:$0xff]  ;;  %565 = vmatpush.msra.mxu1 %v542_v0  ;;  %585 = vmatpush.msra.mxu2 %v543_v1  ;;  %v539_v3 = vld [vmem:[#allocation10 + $0x1d0] sm:$0xff]  ;;  %s770_s12 = scalar_lea.hbm %s1606_s7, %s961_s11  ;;  %s772_s3 = sshll.u32 %s414_s1, 4  ;;  %s773_s3 = int_to_ptr.vmem [resolvable:$true] %s772_s3 }
  0x63   : > { %v541_v5 = vld [vmem:[#allocation10 + $0x1e0] sm:$0xff]  ;;  %605 = vmatpush.msra.mxu3 %v544_v4  ;;  %v534_v6 = vld [vmem:[#allocation10 + $0x1a8] sm:$0xff]  ;;  %v535_v7 = vld [vmem:[#allocation10 + $0x1b0] sm:$0xff]  ;;  %s774_s19 = sshll.u32 %s770_s12, 4  ;;  %s756_s17 = scalar_lea.hbm %s1605_s6, %s961_s11  ;;  %s775_s19 = int_to_ptr.hbm [resolvable:$true] %s774_s19 }
  0x64   : > { %545 = vmatpush.msra.mxu0 %v541_v5  ;;  %v540_v8 = vld [vmem:[#allocation10 + $0x1d8] sm:$0xff]  ;;  %566 = vmatpush.msra.mxu1 %v538_v2  ;;  %v537_v9 = vld [vmem:[#allocation10 + $0x1c0] sm:$0xff]  ;;  %v530_v10 = vld [vmem:[#allocation10 + $0x188] sm:$0xff]  ;;  %s746_s18 = scalar_lea.sflag [#allocation13], %s1519_s28  ;;  %s1223_s14 = sshra.s32 %s775_s19, 4  ;;  %s1224_s14 = int_to_ptr.hbm [resolvable:$true] %s1223_s14 }
  0x65   : > { %586 = vmatpush.msra.mxu2 %v539_v3  ;;  %606 = vmatpush.msra.mxu3 %v540_v8  ;;  %v531_v11 = vld [vmem:[#allocation10 + $0x190] sm:$0xff]  ;;  %v536_v12 = vld [vmem:[#allocation10 + $0x1b8] sm:$0xff]  ;;  %v533_v13 = vld [vmem:[#allocation10 + $0x1a0] sm:$0xff]  ;;  %s1225_s27 = scalar_lea.hbm %s1224_s14, 8  ;;  %s1229_s16 = scalar_lea.hbm %s1606_s7, 16 }
  0x66   : > { %546 = vmatpush.msra.mxu0 %v537_v9  ;;  %567 = vmatpush.msra.mxu1 %v534_v6  ;;  %v532_v14 = vld [vmem:[#allocation10 + $0x198] sm:$0xff]  ;;  %v529_v15 = vld [vmem:[#allocation10 + $0x180] sm:$0xff]  ;;  %v526_v16 = vld [vmem:[#allocation10 + $0x168] sm:$0xff]  ;;  %p1226_p13 = scmp.ne.s32.totalorder %s1224_s14, %s1225_s27  ;;  %p1230_p4 = scmp.lt.s32.totalorder %s1224_s14, %s1606_s7 }
  0x67   : > { %587 = vmatpush.msra.mxu2 %v535_v7  ;;  %607 = vmatpush.msra.mxu3 %v536_v12  ;;  %v527_v17 = vld [vmem:[#allocation10 + $0x170] sm:$0xff]  ;;  %v528_v18 = vld [vmem:[#allocation10 + $0x178] sm:$0xff]  ;;  %v525_v19 = vld [vmem:[#allocation10 + $0x160] sm:$0xff]  ;;  %p1231_p1 = scmp.lt.s32.totalorder %s1229_s16, %s1225_s27 }
  0x68   : > { %547 = vmatpush.msra.mxu0 %v533_v13  ;;  %568 = vmatpush.msra.mxu1 %v530_v10  ;;  %v522_v20 = vld [vmem:[#allocation10 + $0x148] sm:$0xff]  ;;  %v523_v21 = vld [vmem:[#allocation10 + $0x150] sm:$0xff]  ;;  %v524_v22 = vld [vmem:[#allocation10 + $0x158] sm:$0xff]  ;;  %p1227_p9 = pnand %p1226_p13, %p1430_p0 }
  0x69   : > { %588 = vmatpush.msra.mxu2 %v531_v11  ;;  %608 = vmatpush.msra.mxu3 %v532_v14  ;;  %v521_v23 = vld [vmem:[#allocation10 + $0x140] sm:$0xff]  ;;  %v518_v24 = vld [vmem:[#allocation10 + $0x128] sm:$0xff]  ;;  %v519_v25 = vld [vmem:[#allocation10 + $0x130] sm:$0xff]  ;;  %p1232_p7 = por %p1231_p1, %p1230_p4 }
  0x6a   : > { %548 = vmatpush.msra.mxu0 %v529_v15  ;;  %569 = vmatpush.msra.mxu1 %v526_v16  ;;  %v520_v26 = vld [vmem:[#allocation10 + $0x138] sm:$0xff]  ;;  %v517_v27 = vld [vmem:[#allocation10 + $0x120] sm:$0xff]  ;;  %v514_v28 = vld [vmem:[#allocation10 + $0x108] sm:$0xff]  ;;  %p1228_p2 = pneg %p1227_p9 }
  0x6b   : > { %589 = vmatpush.msra.mxu2 %v527_v17  ;;  %609 = vmatpush.msra.mxu3 %v528_v18  ;;  %v515_v29 = vld [vmem:[#allocation10 + $0x110] sm:$0xff]  ;;  %v516_v30 = vld [vmem:[#allocation10 + $0x118] sm:$0xff]  ;;  %v513_v31 = vld [vmem:[#allocation10 + $0x100] sm:$0xff] }
  0x6c   : > { %549 = vmatpush.msra.mxu0 %v525_v19  ;;  %570 = vmatpush.msra.mxu1 %v522_v20  ;;  %v510_v32 = vld [vmem:[#allocation10 + $0xe8] sm:$0xff]  ;;  %v511_v33 = vld [vmem:[#allocation10 + $0xf0] sm:$0xff]  ;;  %v512_v34 = vld [vmem:[#allocation10 + $0xf8] sm:$0xff]  ;;  %p1233_p10 = pnand %p1232_p7, %p1228_p2 }
  0x6d   : > { %590 = vmatpush.msra.mxu2 %v523_v21  ;;  %610 = vmatpush.msra.mxu3 %v524_v22  ;;  %v509_v35 = vld [vmem:[#allocation10 + $0xe0] sm:$0xff]  ;;  %v506_v36 = vld [vmem:[#allocation10 + $0xc8] sm:$0xff]  ;;  %v507_v37 = vld [vmem:[#allocation10 + $0xd0] sm:$0xff] }
  0x6e   : > { %550 = vmatpush.msra.mxu0 %v521_v23  ;;  %571 = vmatpush.msra.mxu1 %v518_v24  ;;  %v508_v38 = vld [vmem:[#allocation10 + $0xd8] sm:$0xff]  ;;  %v505_v39 = vld [vmem:[#allocation10 + $0xc0] sm:$0xff]  ;;  %v502_v40 = vld [vmem:[#allocation10 + $0xa8] sm:$0xff] }
  0x6f   : > { %591 = vmatpush.msra.mxu2 %v519_v25  ;;  %611 = vmatpush.msra.mxu3 %v520_v26  ;;  %v503_v41 = vld [vmem:[#allocation10 + $0xb0] sm:$0xff]  ;;  %v504_v42 = vld [vmem:[#allocation10 + $0xb8] sm:$0xff]  ;;  %v501_v43 = vld [vmem:[#allocation10 + $0xa0] sm:$0xff] }
  0x70   : > { %551 = vmatpush.msra.mxu0 %v517_v27  ;;  %572 = vmatpush.msra.mxu1 %v514_v28  ;;  %v498_v44 = vld [vmem:[#allocation10 + $0x88] sm:$0xff]  ;;  %v499_v45 = vld [vmem:[#allocation10 + $0x90] sm:$0xff]  ;;  %v500_v46 = vld [vmem:[#allocation10 + $0x98] sm:$0xff] }
  0x71   : > { %592 = vmatpush.msra.mxu2 %v515_v29  ;;  %612 = vmatpush.msra.mxu3 %v516_v30  ;;  %v497_v47 = vld [vmem:[#allocation10 + $0x80] sm:$0xff]  ;;  %v494_v48 = vld [vmem:[#allocation10 + $0x68] sm:$0xff]  ;;  %v495_v49 = vld [vmem:[#allocation10 + $0x70] sm:$0xff] }
  0x72   : > { %552 = vmatpush.msra.mxu0 %v513_v31  ;;  %573 = vmatpush.msra.mxu1 %v510_v32  ;;  %v496_v50 = vld [vmem:[#allocation10 + $0x78] sm:$0xff]  ;;  %v493_v51 = vld [vmem:[#allocation10 + $0x60] sm:$0xff]  ;;  %v490_v52 = vld [vmem:[#allocation10 + $0x48] sm:$0xff] }
  0x73   : > { %593 = vmatpush.msra.mxu2 %v511_v33  ;;  %613 = vmatpush.msra.mxu3 %v512_v34  ;;  %v491_v53 = vld [vmem:[#allocation10 + $0x50] sm:$0xff]  ;;  %v492_v54 = vld [vmem:[#allocation10 + $0x58] sm:$0xff]  ;;  %v489_v55 = vld [vmem:[#allocation10 + $0x40] sm:$0xff] }
  0x74   : > { %553 = vmatpush.msra.mxu0 %v509_v35  ;;  %574 = vmatpush.msra.mxu1 %v506_v36  ;;  %v486_v56 = vld [vmem:[#allocation10 + $0x28] sm:$0xff]  ;;  %v487_v57 = vld [vmem:[#allocation10 + $0x30] sm:$0xff]  ;;  %v488_v58 = vld [vmem:[#allocation10 + $0x38] sm:$0xff] }
  0x75   : > { %594 = vmatpush.msra.mxu2 %v507_v37  ;;  %614 = vmatpush.msra.mxu3 %v508_v38  ;;  %v485_v59 = vld [vmem:[#allocation10 + $0x20] sm:$0xff]  ;;  %v482_v60 = vld [vmem:[#allocation10 + $0x8] sm:$0xff]  ;;  %v483_v61 = vld [vmem:[#allocation10 + $0x10] sm:$0xff] }
  0x76   : > { %554 = vmatpush.msra.mxu0 %v505_v39  ;;  %575 = vmatpush.msra.mxu1 %v502_v40  ;;  %v477_v62 = vld [vmem:[#allocation8 + $0x1e8] sm:$0xff]  ;;  %v478_v63 = vld [vmem:[#allocation8 + $0x1f0] sm:$0xff]  ;;  %v484_v0 = vld [vmem:[#allocation10 + $0x18] sm:$0xff] }
  0x77   : > { %595 = vmatpush.msra.mxu2 %v503_v41  ;;  %615 = vmatpush.msra.mxu3 %v504_v42  ;;  %v481_v1 = vld [vmem:[#allocation10] sm:$0xff]  ;;  %v473_v2 = vld [vmem:[#allocation8 + $0x1c8] sm:$0xff]  ;;  %v474_v3 = vld [vmem:[#allocation8 + $0x1d0] sm:$0xff] }
  0x78   : > { %555 = vmatpush.msra.mxu0 %v501_v43  ;;  %576 = vmatpush.msra.mxu1 %v498_v44  ;;  %v479_v4 = vld [vmem:[#allocation8 + $0x1f8] sm:$0xff]  ;;  %v476_v5 = vld [vmem:[#allocation8 + $0x1e0] sm:$0xff]  ;;  %v469_v6 = vld [vmem:[#allocation8 + $0x1a8] sm:$0xff] }
  0x79   : > { %596 = vmatpush.msra.mxu2 %v499_v45  ;;  %616 = vmatpush.msra.mxu3 %v500_v46  ;;  %v470_v7 = vld [vmem:[#allocation8 + $0x1b0] sm:$0xff]  ;;  %v475_v8 = vld [vmem:[#allocation8 + $0x1d8] sm:$0xff]  ;;  %v472_v9 = vld [vmem:[#allocation8 + $0x1c0] sm:$0xff] }
  0x7a   : > { %556 = vmatpush.msra.mxu0 %v497_v47  ;;  %577 = vmatpush.msra.mxu1 %v494_v48  ;;  %v465_v10 = vld [vmem:[#allocation8 + $0x188] sm:$0xff]  ;;  %v466_v11 = vld [vmem:[#allocation8 + $0x190] sm:$0xff]  ;;  %v471_v12 = vld [vmem:[#allocation8 + $0x1b8] sm:$0xff] }
  0x7b   : > { %597 = vmatpush.msra.mxu2 %v495_v49  ;;  %617 = vmatpush.msra.mxu3 %v496_v50  ;;  %v468_v13 = vld [vmem:[#allocation8 + $0x1a0] sm:$0xff]  ;;  %v461_v14 = vld [vmem:[#allocation8 + $0x168] sm:$0xff]  ;;  %v462_v15 = vld [vmem:[#allocation8 + $0x170] sm:$0xff] }
  0x7c   : > { %557 = vmatpush.msra.mxu0 %v493_v51  ;;  %578 = vmatpush.msra.mxu1 %v490_v52  ;;  %v467_v16 = vld [vmem:[#allocation8 + $0x198] sm:$0xff]  ;;  %v464_v17 = vld [vmem:[#allocation8 + $0x180] sm:$0xff]  ;;  %v457_v18 = vld [vmem:[#allocation8 + $0x148] sm:$0xff] }
  0x7d   : > { %598 = vmatpush.msra.mxu2 %v491_v53  ;;  %618 = vmatpush.msra.mxu3 %v492_v54  ;;  %v458_v19 = vld [vmem:[#allocation8 + $0x150] sm:$0xff]  ;;  %v463_v20 = vld [vmem:[#allocation8 + $0x178] sm:$0xff]  ;;  %v460_v21 = vld [vmem:[#allocation8 + $0x160] sm:$0xff] }
  0x7e   : > { %558 = vmatpush.msra.mxu0 %v489_v55  ;;  %579 = vmatpush.msra.mxu1 %v486_v56  ;;  %v453_v22 = vld [vmem:[#allocation8 + $0x128] sm:$0xff]  ;;  %v454_v23 = vld [vmem:[#allocation8 + $0x130] sm:$0xff]  ;;  %v459_v24 = vld [vmem:[#allocation8 + $0x158] sm:$0xff] }
  0x7f   : > { %599 = vmatpush.msra.mxu2 %v487_v57  ;;  %619 = vmatpush.msra.mxu3 %v488_v58  ;;  %v456_v25 = vld [vmem:[#allocation8 + $0x140] sm:$0xff]  ;;  %v449_v26 = vld [vmem:[#allocation8 + $0x108] sm:$0xff]  ;;  %v450_v27 = vld [vmem:[#allocation8 + $0x110] sm:$0xff] }
  0x80   : > { %559 = vmatpush.msra.mxu0 %v485_v59  ;;  %580 = vmatpush.msra.mxu1 %v482_v60  ;;  %v455_v28 = vld [vmem:[#allocation8 + $0x138] sm:$0xff]  ;;  %v452_v29 = vld [vmem:[#allocation8 + $0x120] sm:$0xff]  ;;  %v445_v30 = vld [vmem:[#allocation8 + $0xe8] sm:$0xff] }
  0x81   : > { %600 = vmatpush.msra.mxu2 %v483_v61  ;;  %620 = vmatpush.msra.mxu3 %v484_v0  ;;  %v446_v31 = vld [vmem:[#allocation8 + $0xf0] sm:$0xff]  ;;  %v451_v32 = vld [vmem:[#allocation8 + $0x118] sm:$0xff]  ;;  %v448_v33 = vld [vmem:[#allocation8 + $0x100] sm:$0xff] }
  0x82   : > { %645 = vmatpush.msrb.mxu1 %v477_v62  ;;  %560 = vmatpush.msra.mxu0 %v481_v1  ;;  %v441_v34 = vld [vmem:[#allocation8 + $0xc8] sm:$0xff]  ;;  %v442_v35 = vld [vmem:[#allocation8 + $0xd0] sm:$0xff]  ;;  %v447_v36 = vld [vmem:[#allocation8 + $0xf8] sm:$0xff] }
  0x83   : > { %665 = vmatpush.msrb.mxu2 %v478_v63  ;;  %685 = vmatpush.msrb.mxu3 %v479_v4  ;;  %v444_v37 = vld [vmem:[#allocation8 + $0xe0] sm:$0xff]  ;;  %v437_v38 = vld [vmem:[#allocation8 + $0xa8] sm:$0xff]  ;;  %v438_v39 = vld [vmem:[#allocation8 + $0xb0] sm:$0xff] }
  0x84   : > { %646 = vmatpush.msrb.mxu1 %v473_v2  ;;  %625 = vmatpush.msrb.mxu0 %v476_v5  ;;  %v443_v40 = vld [vmem:[#allocation8 + $0xd8] sm:$0xff]  ;;  %v440_v41 = vld [vmem:[#allocation8 + $0xc0] sm:$0xff]  ;;  %v433_v42 = vld [vmem:[#allocation8 + $0x88] sm:$0xff] }
  0x85   : > { %666 = vmatpush.msrb.mxu2 %v474_v3  ;;  %686 = vmatpush.msrb.mxu3 %v475_v8  ;;  %v434_v43 = vld [vmem:[#allocation8 + $0x90] sm:$0xff]  ;;  %v480_v44 = vld [vmem:[%s348_s30] sm:$0xff]  ;;  %v439_v45 = vld [vmem:[#allocation8 + $0xb8] sm:$0xff] }
  0x86   : > { %647 = vmatpush.msrb.mxu1 %v469_v6  ;;  %626 = vmatpush.msrb.mxu0 %v472_v9  ;;  %v436_v46 = vld [vmem:[#allocation8 + $0xa0] sm:$0xff]  ;;  %v429_v47 = vld [vmem:[#allocation8 + $0x68] sm:$0xff]  ;;  %v430_v48 = vld [vmem:[#allocation8 + $0x70] sm:$0xff] }
  0x87   : > { %667 = vmatpush.msrb.mxu2 %v470_v7  ;;  %687 = vmatpush.msrb.mxu3 %v471_v12  ;;  %v435_v49 = vld [vmem:[#allocation8 + $0x98] sm:$0xff]  ;;  %v432_v50 = vld [vmem:[#allocation8 + $0x80] sm:$0xff]  ;;  %v425_v51 = vld [vmem:[#allocation8 + $0x48] sm:$0xff] }
  0x88   : > { %648 = vmatpush.msrb.mxu1 %v465_v10  ;;  %627 = vmatpush.msrb.mxu0 %v468_v13  ;;  %v426_v52 = vld [vmem:[#allocation8 + $0x50] sm:$0xff]  ;;  %v431_v53 = vld [vmem:[#allocation8 + $0x78] sm:$0xff]  ;;  %v428_v54 = vld [vmem:[#allocation8 + $0x60] sm:$0xff] }
  0x89   : > { %668 = vmatpush.msrb.mxu2 %v466_v11  ;;  %688 = vmatpush.msrb.mxu3 %v467_v16  ;;  %v421_v55 = vld [vmem:[#allocation8 + $0x28] sm:$0xff]  ;;  %v422_v56 = vld [vmem:[#allocation8 + $0x30] sm:$0xff]  ;;  %v427_v57 = vld [vmem:[#allocation8 + $0x58] sm:$0xff] }
  0x8a   : > { %649 = vmatpush.msrb.mxu1 %v461_v14  ;;  %628 = vmatpush.msrb.mxu0 %v464_v17  ;;  %v424_v58 = vld [vmem:[#allocation8 + $0x40] sm:$0xff]  ;;  %v417_v59 = vld [vmem:[#allocation8 + $0x8] sm:$0xff]  ;;  %v418_v60 = vld [vmem:[#allocation8 + $0x10] sm:$0xff] }
  0x8b   : > { %669 = vmatpush.msrb.mxu2 %v462_v15  ;;  %689 = vmatpush.msrb.mxu3 %v463_v20  ;;  %v415_v61 = vld [vmem:[%s338_s23] sm:$0xff]  ;;  %v420_v63 = vld [vmem:[#allocation8 + $0x20] sm:$0xff] }
  0x8c   : > { %650 = vmatpush.msrb.mxu1 %v457_v18  ;;  %629 = vmatpush.msrb.mxu0 %v460_v21  ;;  %v423_v62 = vld [vmem:[#allocation8 + $0x38] sm:$0xff]  ;;  %v416_v1 = vld [vmem:[#allocation8] sm:$0xff]  ;;  %v705_v5 = vld [vmem:[%s1604_s5] sm:$0xf] }
  0x8d   : > { %670 = vmatpush.msrb.mxu2 %v458_v19  ;;  %690 = vmatpush.msrb.mxu3 %v459_v24  ;;  %v419_v0 = vld [vmem:[#allocation8 + $0x18] sm:$0xff]  ;;  %v708_v6 = vperm.slane %v705_v5, 1  ;;  %v709_v12 = vperm.slane %v705_v5, 2  ;;  %v707_v17 = vperm.slane %v705_v5, 0  ;;  %v710_v19 = vperm.slane %v705_v5, 3 }
  0x8e   : > { %651 = vmatpush.msrb.mxu1 %v453_v22  ;;  %630 = vmatpush.msrb.mxu0 %v456_v25 }
  0x8f   : > { %671 = vmatpush.msrb.mxu2 %v454_v23  ;;  %691 = vmatpush.msrb.mxu3 %v455_v28 }
  0x90   : > { %652 = vmatpush.msrb.mxu1 %v449_v26  ;;  %631 = vmatpush.msrb.mxu0 %v452_v29 }
  0x91   : > { %672 = vmatpush.msrb.mxu2 %v450_v27  ;;  %692 = vmatpush.msrb.mxu3 %v451_v32 }
  0x92   : > { %653 = vmatpush.msrb.mxu1 %v445_v30  ;;  %632 = vmatpush.msrb.mxu0 %v448_v33 }
  0x93   : > { %673 = vmatpush.msrb.mxu2 %v446_v31  ;;  %693 = vmatpush.msrb.mxu3 %v447_v36  ;;  %v732_v31 = vld [vmem:[%s358_s24] sm:$0xff] }
  0x94   : > { %654 = vmatpush.msrb.mxu1 %v441_v34  ;;  %633 = vmatpush.msrb.mxu0 %v444_v37 }
  0x95   : > { %674 = vmatpush.msrb.mxu2 %v442_v35  ;;  %694 = vmatpush.msrb.mxu3 %v443_v40 }
  0x96   : > { %655 = vmatpush.msrb.mxu1 %v437_v38  ;;  %634 = vmatpush.msrb.mxu0 %v440_v41 }
  0x97   : > { %675 = vmatpush.msrb.mxu2 %v438_v39  ;;  %581 = vmatmul.f32.vlgmr.msra.gmra.mxu1 %v480_v44 }
  0x98   : > { %656 = vmatpush.msrb.mxu1 %v433_v42  ;;  %601 = vmatmul.f32.vlgmr.msra.gmra.mxu2 %v480_v44 }
  0x99   : > { %676 = vmatpush.msrb.mxu2 %v434_v43  ;;  %695 = vmatpush.msrb.mxu3 %v439_v45 }
  0x9a   : > { %635 = vmatpush.msrb.mxu0 %v436_v46  ;;  %657 = vmatpush.msrb.mxu1 %v429_v47 }
  0x9b   : > { %677 = vmatpush.msrb.mxu2 %v430_v48  ;;  %696 = vmatpush.msrb.mxu3 %v435_v49 }
  0x9c   : > { %636 = vmatpush.msrb.mxu0 %v432_v50  ;;  %621 = vmatmul.f32.vlgmr.msra.gmra.mxu3 %v480_v44 }
  0x9d   : > { %658 = vmatpush.msrb.mxu1 %v425_v51  ;;  %678 = vmatpush.msrb.mxu2 %v426_v52 }
  0x9e   : > { %561 = vmatmul.f32.vlgmr.msra.gmra.mxu0 %v480_v44  ;;  %697 = vmatpush.msrb.mxu3 %v431_v53 }
  0x9f   : > { %637 = vmatpush.msrb.mxu0 %v428_v54  ;;  %659 = vmatpush.msrb.mxu1 %v421_v55 }
  0xa0   : > { %679 = vmatpush.msrb.mxu2 %v422_v56  ;;  %698 = vmatpush.msrb.mxu3 %v427_v57 }
  0xa1   : > { %638 = vmatpush.msrb.mxu0 %v424_v58  ;;  %660 = vmatpush.msrb.mxu1 %v417_v59 }
  0xa2   : > { %680 = vmatpush.msrb.mxu2 %v418_v60  ;;  %661 = vmatmul.f32.vlgmr.msrb.gmra.mxu1 %v415_v61 }
  0xa3   : > { %681 = vmatmul.f32.vlgmr.msrb.gmra.mxu2 %v415_v61  ;;  %699 = vmatpush.msrb.mxu3 %v423_v62 }
  0xa4   : > { %639 = vmatpush.msrb.mxu0 %v420_v63 }
  0xa5   : > { %700 = vmatpush.msrb.mxu3 %v419_v0 }
  0xa6   : > { %640 = vmatpush.msrb.mxu0 %v416_v1  ;;  %701 = vmatmul.f32.vlgmr.msrb.gmra.mxu3 %v415_v61 }
  0xa7   : > { %641 = vmatmul.f32.vlgmr.msrb.gmra.mxu0 %v415_v61 }
 0x114   : > { %v582_v2 = vpop.f32.mrf.mxu1 }
 0x11b   : > { %v562_v3 = vpop.f32.mrf.mxu0  ;;  %v602_v4 = vpop.f32.mrf.mxu2 }
 0x11f   : > { %v662_v7 = vpop.f32.mrf.mxu1  ;;  %v622_v8 = vpop.f32.mrf.mxu3 }
 0x120   : > { %v663_v9 = vadd.f32 %v662_v7, %v582_v2 }
 0x122   : > { %v716_v10 = vadd.f32 %v708_v6, %v663_v9 }
 0x124   : > { %v720_v11 = vmul.f32 0.5, %v716_v10  ;;  %v642_v13 = vpop.f32.mrf.mxu0 }
 0x125   : > { %v643_v16 = vadd.f32 %v642_v13, %v562_v3 }
 0x126   : > { %v682_v14 = vpop.f32.mrf.mxu2  ;;  %1049 = vtanh.f32 %v720_v11 }
 0x127   : > { %v683_v15 = vadd.f32 %v682_v14, %v602_v4  ;;  %v715_v24 = vadd.f32 %v707_v17, %v643_v16 }
 0x129   : > { %v717_v18 = vadd.f32 %v709_v12, %v683_v15  ;;  %v702_v20 = vpop.f32.mrf.mxu3 }
 0x12a   : > { %v703_v22 = vadd.f32 %v702_v20, %v622_v8 }
 0x12b   : > { %v724_v21 = vmul.f32 0.5, %v717_v18 }
 0x12c   : > { %v1050_v23 = vpop.eup %1049  ;;  %v718_v25 = vadd.f32 %v710_v19, %v703_v22 }
 0x12d   : > { %1051 = vtanh.f32 %v724_v21  ;;  %v722_v26 = vmul.f32 0.5, %v1050_v23 }
 0x12e   : > { %v728_v27 = vmul.f32 0.5, %v718_v25  ;;  %1053 = vtanh.f32 %v715_v24 }
 0x12f   : > { %v723_v29 = vadd.f32 0.5, %v722_v26 }
 0x130   : > { %1055 = vtanh.f32 %v728_v27 }
 0x131   : > { %v733_v34 = vmul.f32 %v732_v31, %v723_v29 }
 0x133   : > { %v1052_v28 = vpop.eup %1051 }
 0x134   : > { %v726_v30 = vmul.f32 0.5, %v1052_v28  ;;  %v1054_v33 = vpop.eup %1053 }
 0x136   : > { %v727_v32 = vadd.f32 0.5, %v726_v30  ;;  %v1056_v36 = vpop.eup %1055 }
 0x137   : > { %v730_v38 = vmul.f32 0.5, %v1056_v36 }
 0x138   : > { %v734_v35 = vmul.f32 %v1054_v33, %v727_v32 }
 0x13a   : > { %v735_v37 = vadd.f32 %v734_v35, %v733_v34 }
 0x13c   : > { %1057 = vtanh.f32 %v735_v37  ;;  %739 = vst [vmem:[%s414_s1] sm:$0xff] %v735_v37 }
 0x13d   : > { %1236 = shalt.err (!%p1233_p10)
}
 0x13e   : > { %980 = dma.vmem_to_hbm [thread:$0]  (%p1430_p0), %s773_s3, 128, %s775_s19, %s746_s18   ;;  %v731_v39 = vadd.f32 0.5, %v730_v38 }
 0x13f   : > { %s407_s20 = scalar_lea.vmem [#allocation11], %s1522_s29  ;;  %s760_s11 = sshll.u32 %s756_s17, 4  ;;  %s761_s11 = int_to_ptr.hbm [resolvable:$true] %s760_s11 }
 0x140   : > { %s758_s10 = sshll.u32 %s407_s20, 4  ;;  %s741_s15 = scalar_lea.sflag [#allocation4], %s1519_s28  ;;  %s759_s10 = int_to_ptr.vmem [resolvable:$true] %s758_s10 }
 0x141   : > { %s1251_s13 = sshra.s32 %s761_s11, 4  ;;  %s1257_s29 = scalar_lea.hbm %s1605_s6, 16  ;;  %s1252_s13 = int_to_ptr.hbm [resolvable:$true] %s1251_s13 }
 0x142   : > { %v1058_v40 = vpop.eup %1057  ;;  %s1253_s12 = scalar_lea.hbm %s1252_s13, 8  ;;  %p1258_p3 = scmp.lt.s32.totalorder %s1252_s13, %s1605_s6 }
 0x143   : > { %v737_v41 = vmul.f32 %v1058_v40, %v731_v39  ;;  %p1254_p6 = scmp.ne.s32.totalorder %s1252_s13, %s1253_s12  ;;  %p1259_p8 = scmp.lt.s32.totalorder %s1257_s29, %s1253_s12 }
 0x145   : > { %738 = vst [vmem:[%s407_s20] sm:$0xff] %v737_v41  ;;  %p1255_p11 = pnand %p1254_p6, %p1430_p0  ;;  %p1260_p13 = por %p1259_p8, %p1258_p3 }
 0x147   : > { %p1256_p12 = pneg %p1255_p11 }
 0x149   : > { %p1261_p9 = pnand %p1260_p13, %p1256_p12 }
 0x14b   : > { %1264 = shalt.err (!%p1261_p9)
}
 0x14c   : > { %979 = dma.vmem_to_hbm [thread:$0]  (%p1430_p0), %s759_s10, 128, %s761_s11, %s741_s15  }
 0x14d PF: > { %s1636_s28 = sld [smem:[#allocation19_spill]] }
 0x14e   : > { %s1638_s17 = sld [smem:[#allocation20_spill]] }
 0x153   : > { %s786_s18 = sand.u32 1, %s1636_s28  }
 0x154   : > { %p1639_p2 = scmp.ge.s32.totalorder %s1638_s17, 2  ;;  %s787_s14 = scalar_lea.sflag [#allocation4], %s786_s18 }
 0x156   : > { %p1001_p4 = pnand %p1639_p2, %p1436_p5 }
 0x158   : > { %p1002_p1 = pneg %p1001_p4 }
 0x15a   : > { %1294 = dma.done.wait (%p1002_p1), %s787_s14, 128  }
 0x15b   : > { %1296 = vsyncadd (%p1002_p1), %s787_s14, 4294967168  ;;  %s797_s27 = scalar_lea.sflag [#allocation13], %s786_s18 }
 0x15c   : > { %1298 = dma.done.wait (%p1002_p1), %s797_s27, 128  }
 0x15d   : > { %1300 = vsyncadd (%p1002_p1), %s797_s27, 4294967168  ;;  %s1640_s27 = sld [smem:[#allocation21_spill]]  ;;  %s1642_s24 = smov %s1307_s25 }
 0x15e   : > { %s1641_s21 = sld [smem:[#allocation22_spill]]  ;;  %s1643_s25 = smov %s1311_s26 }
 0x163   : > { %p28_p0 = scmp.ge.s32.totalorder %s1640_s27, 4  }
 0x164   : > { %s1644_s26 = smov %s1641_s21 }
 0x165   :  { %30 = sbr.rel (!%p28_p0) target bundleno = 13 (0xd), region = 138 }
 0x16a   :  { %803 = vsyncpa [#allocation3], 1 }
 0x16b   :  { %805 = vsyncpa [#allocation3 + $0x1], 1 }
 0x16c   :  { %806 = vsyncpa [#allocation6], 1 }
 0x16d   :  { %808 = vsyncpa [#allocation6 + $0x1], 1 }
 0x16e   :  { %809 = vsyncpa [#allocation9], 1 }
 0x16f   :  { %810 = vsyncpa [#allocation4], 1 }
 0x170   :  { %812 = vsyncpa [#allocation4 + $0x1], 1 }
 0x171   :  { %813 = vsyncpa [#allocation13], 1 }
 0x172   :  { %815 = vsyncpa [#allocation13 + $0x1], 1 }

</bundles_post_ra>
